<compile_context>
chip_gen: v6e
topology: v6e:2x2x1
jax: 0.10.0
libtpu: 0.0.40
codegen_flags: <defaults>
</compile_context>

<pallas_src>
import functools

import numpy as np
import jax
import jax.numpy as jnp
from jax import lax
from jax.experimental import pallas as pl
from jax.experimental.pallas import tpu as pltpu

LRELU_SLOPE = 0.2
BN_EPS = 1e-5


def _tpu_vmem_bytes():
    """Per-core VMEM capacity; conservative (v7x, 64 MiB) fallback on failure."""
    try:
        return int(pltpu.get_tpu_info().vmem_capacity_bytes)
    except Exception:
        return 64 * 1024 * 1024


def _pick_tile_h(H, W, cin, cout, out_ch, out_elt_bytes, budget_bytes, aligned):
    """Largest row tile TH dividing H whose real working set fits the budget.

    `aligned=True` (fused-classifier layer) additionally requires TH % 8 == 0 or
    TH == H so the lane-dense (1, TH, W) output block is a legal TPU tile.
    """
    def legal(th):
        return H % th == 0 and (not aligned or th % 8 == 0 or th == H)

    best = None
    for th in range(1, H + 1):
        if not legal(th):
            continue
        ext = 2 * (th + 2) * W * cin                   # bf16 extended row tile
        need = (
            2 * 2 * th * W * cin                       # main input block, double-buffered
            + 2 * 2 * 2 * W * cin                      # halo rows, double-buffered
            + 3 * ext                                  # extended tile + 2 dx-shifted slabs
            + ext                                      # reshape / relayout slack
            + 2 * 4 * th * W * cout                    # f32 accumulator + post-affine temp
            + 2 * th * W * out_ch * out_elt_bytes      # output block, double-buffered
            + 2 * 2 * 9 * cin * cout                   # weights, double-buffered
        )
        if need <= budget_bytes:
            best = th
    if best is None:                                   # tiny budget: smallest legal tile
        best = next(th for th in range(1, H + 1) if legal(th))
    return best


def _conv3x3_kernel(*refs, fuse_cls, slope):
    """3x3 conv (stride 1, pad 1) + folded BN affine + LeakyReLU on one row tile.

    refs (fuse_cls=False): x, top, bot, w, scale, shift, out
    refs (fuse_cls=True):  x, top, bot, w, scale, shift, cls_w, cls_b, out

      x:     (1, TH, W, Cin) rows [r*TH, r*TH+TH) of the *unpadded* input (bf16)
      top:   (1, 1,  W, Cin) row r*TH-1  (clamped; zeroed in-kernel when r == 0)
      bot:   (1, 1,  W, Cin) row r*TH+TH (clamped; zeroed when r == last)
      w:     (9, Cin, Cout)  (kh, kw)-major tap weights                  (bf16)
      scale: (1, Cout)       BN gamma/sqrt(var+eps), or 1                (f32)
      shift: (1, Cout)       BN beta - mean*scale, or conv bias          (f32)
      cls_w: (1, Cout)       fused 1x1 classifier weights                (f32)
      cls_b: (1, 1)          classifier bias                             (f32)
      out:   (1, TH, W, Cout) bf16, or (1, TH, W) f32 when fused
    """
    if fuse_cls:
        (x_ref, top_ref, bot_ref, w_ref, scale_ref, shift_ref,
         cw_ref, cb_ref, o_ref) = refs
    else:
        x_ref, top_ref, bot_ref, w_ref, scale_ref, shift_ref, o_ref = refs

    _, TH, W, Cin = x_ref.shape
    Cout = w_ref.shape[-1]
    r = pl.program_id(1)
    last = pl.num_programs(1) - 1

    # Zero the clamped halo rows at the image border (replaces HBM-side padding).
    top = top_ref[0] * (r > 0).astype(x_ref.dtype)           # (1, W, Cin)
    bot = bot_ref[0] * (r < last).astype(x_ref.dtype)        # (1, W, Cin)

    # Extended row tile covering padded rows [r*TH-1, r*TH+TH+1).
    rows = jnp.concatenate([top, x_ref[0], bot], axis=0)     # (TH+2, W, Cin)

    # dx-shifted slabs with an in-VMEM zero column at the left/right border.
    # TODO(synk): pltpu.roll along the W (sublane) axis would move these shifts
    #             to the XLU; kept as concat+slice for robust lowering.
    zc = jnp.zeros((TH + 2, 1, Cin), rows.dtype)
    x_l = jnp.concatenate([zc, rows[:, : W - 1, :]], axis=1)  # col x -> rows col x-1
    x_r = jnp.concatenate([rows[:, 1:, :], zc], axis=1)       # col x -> rows col x+1
    shifted = (x_l, rows, x_r)

    # 9 accumulating per-tap matmuls (K = Cin) -- no im2col col matrix.
    acc = jnp.zeros((TH * W, Cout), jnp.float32)
    for dy in range(3):
        for dx in range(3):
            slab = shifted[dx][dy:dy + TH].reshape(TH * W, Cin)
            acc = acc + jnp.dot(slab, w_ref[dy * 3 + dx],
                                preferred_element_type=jnp.float32)

    y = acc * scale_ref[0] + shift_ref[0]                     # folded BN / bias (f32)
    y = jnp.where(y >= 0, y, slope * y)                       # LeakyReLU

    if fuse_cls:
        # Fused 1x1 classifier (out_channels == 1): VPU multiply + lane reduction;
        # the (TH, W) f32 result keeps W on the lane axis (dense stores).
        yb = y.astype(jnp.bfloat16).astype(jnp.float32).reshape(TH, W, Cout)
        z = jnp.sum(yb * cw_ref[0], axis=-1) + cb_ref[0, 0]
        o_ref[0] = z
    else:
        o_ref[0] = y.reshape(TH, W, Cout).astype(o_ref.dtype)


def conv3x3_bn_lrelu(x, w9, scale, shift, *, tile_h=None,
                     cls_w=None, cls_b=None, slope=LRELU_SLOPE):
    """One 3x3/s1/p1 conv layer.  x: (N, H, W, Cin) NHWC (cast to bf16).
    w9: (9, Cin, Cout) tap-major weights.  Optionally fuses the 1x1 classifier
    (out_channels == 1) and then returns a lane-dense (N, H, W) float32 map."""
    x = x.astype(jnp.bfloat16)
    N, H, W, Cin = x.shape
    Cout = w9.shape[-1]
    fuse_cls = cls_w is not None
    if fuse_cls and int(np.prod(cls_w.shape)) != Cout:
        raise ValueError("fused classifier supports out_channels == 1 only")

    vmem_cap = _tpu_vmem_bytes()
    vmem_limit = min(int(0.7 * vmem_cap), 100 * 1024 * 1024)
    if tile_h is None:
        tile_h = _pick_tile_h(H, W, Cin, Cout,
                              out_ch=1 if fuse_cls else Cout,
                              out_elt_bytes=4 if fuse_cls else 2,
                              budget_bytes=int(0.6 * vmem_limit),
                              aligned=fuse_cls)
    TH = tile_h
    if H % TH:
        raise ValueError(f"tile_h={TH} must divide H={H}")
    if fuse_cls and not (TH % 8 == 0 or TH == H):
        raise ValueError(
            f"fused-classifier layer needs tile_h % 8 == 0 or tile_h == H (got {TH})")

    kernel = functools.partial(_conv3x3_kernel, fuse_cls=fuse_cls, slope=slope)

    in_specs = [
        # main rows [r*TH, r*TH+TH) of the unpadded activation
        pl.BlockSpec((1, TH, W, Cin), lambda n, r: (n, r, 0, 0)),
        # 1-row top halo, clamped at the image border (zeroed in-kernel)
        pl.BlockSpec((1, 1, W, Cin),
                     lambda n, r: (n, jnp.maximum(r * TH - 1, 0), 0, 0)),
        # 1-row bottom halo, clamped at the image border (zeroed in-kernel)
        pl.BlockSpec((1, 1, W, Cin),
                     lambda n, r: (n, jnp.minimum((r + 1) * TH, H - 1), 0, 0)),
        pl.BlockSpec((9, Cin, Cout), lambda n, r: (0, 0, 0)),
        pl.BlockSpec((1, Cout), lambda n, r: (0, 0)),
        pl.BlockSpec((1, Cout), lambda n, r: (0, 0)),
    ]
    args = [x, x, x, w9.astype(jnp.bfloat16),
            scale.reshape(1, Cout).astype(jnp.float32),
            shift.reshape(1, Cout).astype(jnp.float32)]

    if fuse_cls:
        in_specs += [pl.BlockSpec((1, Cout), lambda n, r: (0, 0)),
                     pl.BlockSpec((1, 1), lambda n, r: (0, 0))]
        # bf16-round the classifier weights so the fused VPU path matches a
        # bf16 x bf16 -> f32 1x1 convolution.
        args += [cls_w.reshape(1, Cout).astype(jnp.bfloat16).astype(jnp.float32),
                 cls_b.reshape(1, 1).astype(jnp.float32)]
        out_shape = jax.ShapeDtypeStruct((N, H, W), jnp.float32)
        out_specs = pl.BlockSpec((1, TH, W), lambda n, r: (n, r, 0))
    else:
        out_shape = jax.ShapeDtypeStruct((N, H, W, Cout), jnp.bfloat16)
        out_specs = pl.BlockSpec((1, TH, W, Cout), lambda n, r: (n, r, 0, 0))

    return pl.pallas_call(
        kernel,
        out_shape=out_shape,
        grid_spec=pltpu.PrefetchScalarGridSpec(
            num_scalar_prefetch=0,
            grid=(N, H // TH),
            in_specs=in_specs,
            out_specs=out_specs,
        ),
        compiler_params=pltpu.CompilerParams(
            dimension_semantics=("parallel", "parallel"),
            vmem_limit_bytes=vmem_limit,
        ),
    )(*args)


def init_params(key, in_channels=3, out_channels=1, channels=16):
    """Deterministic synthetic parameters matching DiscriminatorForVGG shapes."""
    cfg = [
        # (cin, cout, has_bias, has_bn) for the 8 feature convs (all 3x3, s1, p1)
        (in_channels,  channels,      True,  False),
        (channels,     channels,      False, True),
        (channels,     2 * channels,  False, True),
        (2 * channels, 2 * channels,  False, True),
        (2 * channels, 4 * channels,  False, True),
        (4 * channels, 4 * channels,  False, True),
        (4 * channels, 8 * channels,  False, True),
        (8 * channels, 8 * channels,  False, True),
    ]
    convs = []
    for (cin, cout, has_bias, has_bn) in cfg:
        key, kw_, kb, kg, kbt, km, kv = jax.random.split(key, 7)
        w_oihw = jax.random.normal(kw_, (cout, cin, 3, 3), jnp.float32) \
                 * (1.0 / np.sqrt(cin * 9))
        # kernel layout: (kh*kw, Cin, Cout), (kh, kw)-major
        w9 = jnp.transpose(w_oihw, (2, 3, 1, 0)).reshape(9, cin, cout) \
                .astype(jnp.bfloat16)
        if has_bn:
            gamma = 1.0 + 0.1 * jax.random.normal(kg, (cout,), jnp.float32)
            beta = 0.1 * jax.random.normal(kbt, (cout,), jnp.float32)
            mean = 0.1 * jax.random.normal(km, (cout,), jnp.float32)
            var = 1.0 + 0.1 * jax.random.uniform(kv, (cout,), jnp.float32)
            scale = gamma / jnp.sqrt(var + BN_EPS)
            shift = beta - mean * scale
        else:
            bias = (0.1 * jax.random.normal(kb, (cout,), jnp.float32)
                    if has_bias else jnp.zeros((cout,), jnp.float32))
            scale = jnp.ones((cout,), jnp.float32)
            shift = bias
        convs.append(dict(w_oihw=w_oihw, w9=w9, scale=scale, shift=shift))

    key, kcw, kcb = jax.random.split(key, 3)
    c_in = 8 * channels
    cls_oihw = jax.random.normal(kcw, (out_channels, c_in, 1, 1), jnp.float32) \
               * (1.0 / np.sqrt(c_in))
    cls_bias = 0.1 * jax.random.normal(kcb, (out_channels,), jnp.float32)
    return dict(convs=convs,
                cls=dict(w_oihw=cls_oihw, w_vec=cls_oihw[0, :, 0, 0], bias=cls_bias))


def discriminator_forward(x_nchw, params, tile_h=None):
    # TODO(synk): the PyTorch forward asserts a 300x300 input; relaxed so the
    # kernel can be exercised at small test shapes (semantics otherwise identical).
    x = jnp.transpose(x_nchw, (0, 2, 3, 1)).astype(jnp.bfloat16)   # NCHW -> NHWC
    convs = params["convs"]
    for i, p in enumerate(convs):
        fuse = (i == len(convs) - 1)   # fuse the 1x1 classifier into the last conv
        x = conv3x3_bn_lrelu(
            x, p["w9"], p["scale"], p["shift"], tile_h=tile_h,
            cls_w=params["cls"]["w_vec"] if fuse else None,
            cls_b=params["cls"]["bias"] if fuse else None)
    return x[:, None, :, :]            # (N, H, W) f32 -> NCHW (N, 1, H, W)


def reference_forward(x_nchw, params):
    """Pure-JAX reference with identical bf16-input / f32-accumulate numerics."""
    a = x_nchw.astype(jnp.bfloat16)
    for p in params["convs"]:
        y = lax.conv_general_dilated(
            a, p["w_oihw"].astype(jnp.bfloat16), window_strides=(1, 1),
            padding=[(1, 1), (1, 1)], dimension_numbers=("NCHW", "OIHW", "NCHW"),
            preferred_element_type=jnp.float32)
        y = y * p["scale"][None, :, None, None] + p["shift"][None, :, None, None]
        y = jnp.where(y >= 0, y, LRELU_SLOPE * y)
        a = y.astype(jnp.bfloat16)
    cls = params["cls"]
    z = lax.conv_general_dilated(
        a, cls["w_oihw"].astype(jnp.bfloat16), window_strides=(1, 1),
        padding=[(0, 0), (0, 0)], dimension_numbers=("NCHW", "OIHW", "NCHW"),
        preferred_element_type=jnp.float32)
    return z + cls["bias"][None, :, None, None]


if __name__ == "__main__":
    key = jax.random.PRNGKey(0)
    kx, kp = jax.random.split(key)

    # Small test shapes: batch=2, in_channels=3, 16x16 spatial, base channels=16.
    # tile_h=8 forces two row tiles per image so the clamped-halo path is exercised.
    N, C, H, W = 2, 3, 16, 16
    x = jax.random.normal(kx, (N, C, H, W), jnp.float32)
    params = init_params(kp, in_channels=C, out_channels=1, channels=16)

    out = jax.block_until_ready(discriminator_forward(x, params, tile_h=8))
    assert out.shape == (N, 1, H, W), out.shape

    ref = jax.block_until_ready(reference_forward(x, params))
    # Both paths use bf16 weights/activations with f32 accumulation; residual
    # differences come only from accumulation order, so a loose tolerance is ample.
    np.testing.assert_allclose(np.asarray(out), np.asarray(ref),
                               atol=3e-2, rtol=3e-2)
    print("KERNEL_OK")
</pallas_src>

<mosaic_0001>
module attributes {stable_mosaic.version = 11 : i64} {
  func.func @_conv3x3_kernel(%arg0: i32, %arg1: i32, %arg2: memref<1x8x16x3xbf16, #tpu.memory_space<vmem>>, %arg3: memref<1x1x16x3xbf16, #tpu.memory_space<vmem>>, %arg4: memref<1x1x16x3xbf16, #tpu.memory_space<vmem>>, %arg5: memref<9x3x16xbf16, #tpu.memory_space<vmem>>, %arg6: memref<1x16xf32, #tpu.memory_space<vmem>>, %arg7: memref<1x16xf32, #tpu.memory_space<vmem>>, %arg8: memref<1x8x16x16xbf16, #tpu.memory_space<vmem>>) attributes {dimension_semantics = [#tpu.dimension_semantics<parallel>, #tpu.dimension_semantics<parallel>], iteration_bounds = array<i64: 2, 2>, scalar_prefetch = 0 : i64, scratch_operands = 0 : i64, tpu.core_type = #tpu.core_type<tc>, window_params = [{transform_indices = @transform_0, window_bounds = array<i64: 1, 8, 16, 3>}, {transform_indices = @transform_1, window_bounds = array<i64: 1, 1, 16, 3>}, {transform_indices = @transform_2, window_bounds = array<i64: 1, 1, 16, 3>}, {pipeline_mode = #tpu.pipeline_mode<synchronous>, transform_indices = @transform_3, window_bounds = array<i64: 9, 3, 16>}, {pipeline_mode = #tpu.pipeline_mode<synchronous>, transform_indices = @transform_4, window_bounds = array<i64: 1, 16>}, {pipeline_mode = #tpu.pipeline_mode<synchronous>, transform_indices = @transform_5, window_bounds = array<i64: 1, 16>}, {transform_indices = @transform_6, window_bounds = array<i64: 1, 8, 16, 16>}]} {
    %c0 = arith.constant 0 : index
    %c0_0 = arith.constant 0 : index
    %c0_1 = arith.constant 0 : index
    %c0_2 = arith.constant 0 : index
    %0 = vector.load %arg3[%c0, %c0_0, %c0_1, %c0_2] : memref<1x1x16x3xbf16, #tpu.memory_space<vmem>>, vector<1x1x16x3xbf16>
    %1 = vector.shape_cast %0 : vector<1x1x16x3xbf16> to vector<1x16x3xbf16>
    %c0_i32 = arith.constant 0 : i32
    %2 = arith.cmpi sgt, %arg1, %c0_i32 : i32
    %3 = arith.extui %2 : i1 to i32
    %4 = arith.sitofp %3 : i32 to f32
    %5 = arith.truncf %4 : f32 to bf16
    %6 = vector.broadcast %5 : bf16 to vector<1x16x3xbf16>
    %7 = arith.mulf %1, %6 : vector<1x16x3xbf16>
    %c0_3 = arith.constant 0 : index
    %c0_4 = arith.constant 0 : index
    %c0_5 = arith.constant 0 : index
    %c0_6 = arith.constant 0 : index
    %8 = vector.load %arg4[%c0_3, %c0_4, %c0_5, %c0_6] : memref<1x1x16x3xbf16, #tpu.memory_space<vmem>>, vector<1x1x16x3xbf16>
    %9 = vector.shape_cast %8 : vector<1x1x16x3xbf16> to vector<1x16x3xbf16>
    %c1_i32 = arith.constant 1 : i32
    %10 = arith.cmpi slt, %arg1, %c1_i32 : i32
    %11 = arith.extui %10 : i1 to i32
    %12 = arith.sitofp %11 : i32 to f32
    %13 = arith.truncf %12 : f32 to bf16
    %14 = vector.broadcast %13 : bf16 to vector<1x16x3xbf16>
    %15 = arith.mulf %9, %14 : vector<1x16x3xbf16>
    %c0_7 = arith.constant 0 : index
    %c0_8 = arith.constant 0 : index
    %c0_9 = arith.constant 0 : index
    %c0_10 = arith.constant 0 : index
    %16 = vector.load %arg2[%c0_7, %c0_8, %c0_9, %c0_10] : memref<1x8x16x3xbf16, #tpu.memory_space<vmem>>, vector<1x8x16x3xbf16>
    %17 = vector.shape_cast %16 : vector<1x8x16x3xbf16> to vector<8x16x3xbf16>
    %18 = tpu.concatenate %7, %17, %15 in 0 : vector<1x16x3xbf16>, vector<8x16x3xbf16>, vector<1x16x3xbf16> -> vector<10x16x3xbf16>
    %cst = arith.constant 0.000000e+00 : bf16
    %19 = vector.broadcast %cst : bf16 to vector<10x1x3xbf16>
    %20 = vector.extract_strided_slice %18 {offsets = [0, 0, 0], sizes = [10, 15, 3], strides = [1, 1, 1]} : vector<10x16x3xbf16> to vector<10x15x3xbf16>
    %21 = tpu.concatenate %19, %20 in 1 : vector<10x1x3xbf16>, vector<10x15x3xbf16> -> vector<10x16x3xbf16>
    %22 = vector.extract_strided_slice %18 {offsets = [0, 1, 0], sizes = [10, 15, 3], strides = [1, 1, 1]} : vector<10x16x3xbf16> to vector<10x15x3xbf16>
    %23 = tpu.concatenate %22, %19 in 1 : vector<10x15x3xbf16>, vector<10x1x3xbf16> -> vector<10x16x3xbf16>
    %cst_11 = arith.constant 0.000000e+00 : f32
    %24 = vector.broadcast %cst_11 : f32 to vector<128x16xf32>
    %25 = vector.extract_strided_slice %21 {offsets = [0, 0, 0], sizes = [8, 16, 3], strides = [1, 1, 1]} : vector<10x16x3xbf16> to vector<8x16x3xbf16>
    %26 = vector.shape_cast %25 : vector<8x16x3xbf16> to vector<128x3xbf16>
    %c0_12 = arith.constant 0 : index
    %c0_13 = arith.constant 0 : index
    %c0_14 = arith.constant 0 : index
    %27 = vector.load %arg5[%c0_12, %c0_13, %c0_14] : memref<9x3x16xbf16, #tpu.memory_space<vmem>>, vector<1x3x16xbf16>
    %28 = vector.shape_cast %27 : vector<1x3x16xbf16> to vector<3x16xbf16>
    %cst_15 = arith.constant dense<0.000000e+00> : vector<128x16xf32>
    %29 = tpu.matmul %26, %28, %cst_15 {dimension_numbers = #tpu.dot_dimension_numbers<[1], [0], [0], [1], [0, 0, 1, 1], [], []>} : vector<128x3xbf16>, vector<3x16xbf16>, vector<128x16xf32> -> vector<128x16xf32>
    %30 = arith.addf %24, %29 : vector<128x16xf32>
    %31 = vector.extract_strided_slice %18 {offsets = [0, 0, 0], sizes = [8, 16, 3], strides = [1, 1, 1]} : vector<10x16x3xbf16> to vector<8x16x3xbf16>
    %32 = vector.shape_cast %31 : vector<8x16x3xbf16> to vector<128x3xbf16>
    %c1 = arith.constant 1 : index
    %c0_16 = arith.constant 0 : index
    %c0_17 = arith.constant 0 : index
    %33 = vector.load %arg5[%c1, %c0_16, %c0_17] : memref<9x3x16xbf16, #tpu.memory_space<vmem>>, vector<1x3x16xbf16>
    %34 = vector.shape_cast %33 : vector<1x3x16xbf16> to vector<3x16xbf16>
    %cst_18 = arith.constant dense<0.000000e+00> : vector<128x16xf32>
    %35 = tpu.matmul %32, %34, %cst_18 {dimension_numbers = #tpu.dot_dimension_numbers<[1], [0], [0], [1], [0, 0, 1, 1], [], []>} : vector<128x3xbf16>, vector<3x16xbf16>, vector<128x16xf32> -> vector<128x16xf32>
    %36 = arith.addf %30, %35 : vector<128x16xf32>
    %37 = vector.extract_strided_slice %23 {offsets = [0, 0, 0], sizes = [8, 16, 3], strides = [1, 1, 1]} : vector<10x16x3xbf16> to vector<8x16x3xbf16>
    %38 = vector.shape_cast %37 : vector<8x16x3xbf16> to vector<128x3xbf16>
    %c2 = arith.constant 2 : index
    %c0_19 = arith.constant 0 : index
    %c0_20 = arith.constant 0 : index
    %39 = vector.load %arg5[%c2, %c0_19, %c0_20] : memref<9x3x16xbf16, #tpu.memory_space<vmem>>, vector<1x3x16xbf16>
    %40 = vector.shape_cast %39 : vector<1x3x16xbf16> to vector<3x16xbf16>
    %cst_21 = arith.constant dense<0.000000e+00> : vector<128x16xf32>
    %41 = tpu.matmul %38, %40, %cst_21 {dimension_numbers = #tpu.dot_dimension_numbers<[1], [0], [0], [1], [0, 0, 1, 1], [], []>} : vector<128x3xbf16>, vector<3x16xbf16>, vector<128x16xf32> -> vector<128x16xf32>
    %42 = arith.addf %36, %41 : vector<128x16xf32>
    %43 = vector.extract_strided_slice %21 {offsets = [1, 0, 0], sizes = [8, 16, 3], strides = [1, 1, 1]} : vector<10x16x3xbf16> to vector<8x16x3xbf16>
    %44 = vector.shape_cast %43 : vector<8x16x3xbf16> to vector<128x3xbf16>
    %c3 = arith.constant 3 : index
    %c0_22 = arith.constant 0 : index
    %c0_23 = arith.constant 0 : index
    %45 = vector.load %arg5[%c3, %c0_22, %c0_23] : memref<9x3x16xbf16, #tpu.memory_space<vmem>>, vector<1x3x16xbf16>
    %46 = vector.shape_cast %45 : vector<1x3x16xbf16> to vector<3x16xbf16>
    %cst_24 = arith.constant dense<0.000000e+00> : vector<128x16xf32>
    %47 = tpu.matmul %44, %46, %cst_24 {dimension_numbers = #tpu.dot_dimension_numbers<[1], [0], [0], [1], [0, 0, 1, 1], [], []>} : vector<128x3xbf16>, vector<3x16xbf16>, vector<128x16xf32> -> vector<128x16xf32>
    %48 = arith.addf %42, %47 : vector<128x16xf32>
    %49 = vector.extract_strided_slice %18 {offsets = [1, 0, 0], sizes = [8, 16, 3], strides = [1, 1, 1]} : vector<10x16x3xbf16> to vector<8x16x3xbf16>
    %50 = vector.shape_cast %49 : vector<8x16x3xbf16> to vector<128x3xbf16>
    %c4 = arith.constant 4 : index
    %c0_25 = arith.constant 0 : index
    %c0_26 = arith.constant 0 : index
    %51 = vector.load %arg5[%c4, %c0_25, %c0_26] : memref<9x3x16xbf16, #tpu.memory_space<vmem>>, vector<1x3x16xbf16>
    %52 = vector.shape_cast %51 : vector<1x3x16xbf16> to vector<3x16xbf16>
    %cst_27 = arith.constant dense<0.000000e+00> : vector<128x16xf32>
    %53 = tpu.matmul %50, %52, %cst_27 {dimension_numbers = #tpu.dot_dimension_numbers<[1], [0], [0], [1], [0, 0, 1, 1], [], []>} : vector<128x3xbf16>, vector<3x16xbf16>, vector<128x16xf32> -> vector<128x16xf32>
    %54 = arith.addf %48, %53 : vector<128x16xf32>
    %55 = vector.extract_strided_slice %23 {offsets = [1, 0, 0], sizes = [8, 16, 3], strides = [1, 1, 1]} : vector<10x16x3xbf16> to vector<8x16x3xbf16>
    %56 = vector.shape_cast %55 : vector<8x16x3xbf16> to vector<128x3xbf16>
    %c5 = arith.constant 5 : index
    %c0_28 = arith.constant 0 : index
    %c0_29 = arith.constant 0 : index
    %57 = vector.load %arg5[%c5, %c0_28, %c0_29] : memref<9x3x16xbf16, #tpu.memory_space<vmem>>, vector<1x3x16xbf16>
    %58 = vector.shape_cast %57 : vector<1x3x16xbf16> to vector<3x16xbf16>
    %cst_30 = arith.constant dense<0.000000e+00> : vector<128x16xf32>
    %59 = tpu.matmul %56, %58, %cst_30 {dimension_numbers = #tpu.dot_dimension_numbers<[1], [0], [0], [1], [0, 0, 1, 1], [], []>} : vector<128x3xbf16>, vector<3x16xbf16>, vector<128x16xf32> -> vector<128x16xf32>
    %60 = arith.addf %54, %59 : vector<128x16xf32>
    %61 = vector.extract_strided_slice %21 {offsets = [2, 0, 0], sizes = [8, 16, 3], strides = [1, 1, 1]} : vector<10x16x3xbf16> to vector<8x16x3xbf16>
    %62 = vector.shape_cast %61 : vector<8x16x3xbf16> to vector<128x3xbf16>
    %c6 = arith.constant 6 : index
    %c0_31 = arith.constant 0 : index
    %c0_32 = arith.constant 0 : index
    %63 = vector.load %arg5[%c6, %c0_31, %c0_32] : memref<9x3x16xbf16, #tpu.memory_space<vmem>>, vector<1x3x16xbf16>
    %64 = vector.shape_cast %63 : vector<1x3x16xbf16> to vector<3x16xbf16>
    %cst_33 = arith.constant dense<0.000000e+00> : vector<128x16xf32>
    %65 = tpu.matmul %62, %64, %cst_33 {dimension_numbers = #tpu.dot_dimension_numbers<[1], [0], [0], [1], [0, 0, 1, 1], [], []>} : vector<128x3xbf16>, vector<3x16xbf16>, vector<128x16xf32> -> vector<128x16xf32>
    %66 = arith.addf %60, %65 : vector<128x16xf32>
    %67 = vector.extract_strided_slice %18 {offsets = [2, 0, 0], sizes = [8, 16, 3], strides = [1, 1, 1]} : vector<10x16x3xbf16> to vector<8x16x3xbf16>
    %68 = vector.shape_cast %67 : vector<8x16x3xbf16> to vector<128x3xbf16>
    %c7 = arith.constant 7 : index
    %c0_34 = arith.constant 0 : index
    %c0_35 = arith.constant 0 : index
    %69 = vector.load %arg5[%c7, %c0_34, %c0_35] : memref<9x3x16xbf16, #tpu.memory_space<vmem>>, vector<1x3x16xbf16>
    %70 = vector.shape_cast %69 : vector<1x3x16xbf16> to vector<3x16xbf16>
    %cst_36 = arith.constant dense<0.000000e+00> : vector<128x16xf32>
    %71 = tpu.matmul %68, %70, %cst_36 {dimension_numbers = #tpu.dot_dimension_numbers<[1], [0], [0], [1], [0, 0, 1, 1], [], []>} : vector<128x3xbf16>, vector<3x16xbf16>, vector<128x16xf32> -> vector<128x16xf32>
    %72 = arith.addf %66, %71 : vector<128x16xf32>
    %73 = vector.extract_strided_slice %23 {offsets = [2, 0, 0], sizes = [8, 16, 3], strides = [1, 1, 1]} : vector<10x16x3xbf16> to vector<8x16x3xbf16>
    %74 = vector.shape_cast %73 : vector<8x16x3xbf16> to vector<128x3xbf16>
    %c8 = arith.constant 8 : index
    %c0_37 = arith.constant 0 : index
    %c0_38 = arith.constant 0 : index
    %75 = vector.load %arg5[%c8, %c0_37, %c0_38] : memref<9x3x16xbf16, #tpu.memory_space<vmem>>, vector<1x3x16xbf16>
    %76 = vector.shape_cast %75 : vector<1x3x16xbf16> to vector<3x16xbf16>
    %cst_39 = arith.constant dense<0.000000e+00> : vector<128x16xf32>
    %77 = tpu.matmul %74, %76, %cst_39 {dimension_numbers = #tpu.dot_dimension_numbers<[1], [0], [0], [1], [0, 0, 1, 1], [], []>} : vector<128x3xbf16>, vector<3x16xbf16>, vector<128x16xf32> -> vector<128x16xf32>
    %78 = arith.addf %72, %77 : vector<128x16xf32>
    %c0_40 = arith.constant 0 : index
    %c0_41 = arith.constant 0 : index
    %79 = vector.load %arg6[%c0_40, %c0_41] : memref<1x16xf32, #tpu.memory_space<vmem>>, vector<1x16xf32>
    %80 = vector.shape_cast %79 : vector<1x16xf32> to vector<16xf32>
    %81 = vector.shape_cast %80 : vector<16xf32> to vector<1x16xf32>
    %82 = vector.broadcast %81 : vector<1x16xf32> to vector<128x16xf32>
    %83 = arith.mulf %78, %82 : vector<128x16xf32>
    %c0_42 = arith.constant 0 : index
    %c0_43 = arith.constant 0 : index
    %84 = vector.load %arg7[%c0_42, %c0_43] : memref<1x16xf32, #tpu.memory_space<vmem>>, vector<1x16xf32>
    %85 = vector.shape_cast %84 : vector<1x16xf32> to vector<16xf32>
    %86 = vector.shape_cast %85 : vector<16xf32> to vector<1x16xf32>
    %87 = vector.broadcast %86 : vector<1x16xf32> to vector<128x16xf32>
    %88 = arith.addf %83, %87 : vector<128x16xf32>
    %cst_44 = arith.constant 0.000000e+00 : f32
    %89 = vector.broadcast %cst_44 : f32 to vector<128x16xf32>
    %90 = arith.cmpf oge, %88, %89 : vector<128x16xf32>
    %cst_45 = arith.constant 2.000000e-01 : f32
    %91 = vector.broadcast %cst_45 : f32 to vector<128x16xf32>
    %92 = arith.mulf %91, %88 : vector<128x16xf32>
    %93 = arith.select %90, %88, %92 : vector<128x16xi1>, vector<128x16xf32>
    %94 = vector.shape_cast %93 : vector<128x16xf32> to vector<8x16x16xf32>
    %95 = arith.truncf %94 : vector<8x16x16xf32> to vector<8x16x16xbf16>
    %c0_46 = arith.constant 0 : index
    %c0_47 = arith.constant 0 : index
    %c0_48 = arith.constant 0 : index
    %c0_49 = arith.constant 0 : index
    %96 = vector.load %arg8[%c0_46, %c0_47, %c0_48, %c0_49] : memref<1x8x16x16xbf16, #tpu.memory_space<vmem>>, vector<1x8x16x16xbf16>
    %97 = vector.shape_cast %96 : vector<1x8x16x16xbf16> to vector<8x16x16xbf16>
    %98 = vector.shape_cast %95 : vector<8x16x16xbf16> to vector<1x8x16x16xbf16>
    tpu.vector_store %arg8[%c0_46, %c0_47, %c0_48, %c0_49], %98 {strides = array<i32>} : memref<1x8x16x16xbf16, #tpu.memory_space<vmem>>, vector<1x8x16x16xbf16>,
    return
  }
  func.func @transform_0(%arg0: i32, %arg1: i32) -> (i32, i32, i32, i32) {
    %c0_i32 = arith.constant 0 : i32
    %c0_i32_0 = arith.constant 0 : i32
    %c0_i32_1 = arith.constant 0 : i32
    return %arg0, %arg1, %c0_i32, %c0_i32_0 : i32, i32, i32, i32
  }
  func.func @transform_1(%arg0: i32, %arg1: i32) -> (i32, i32, i32, i32) {
    %c8_i32 = arith.constant 8 : i32
    %0 = arith.muli %arg1, %c8_i32 : i32
    %c1_i32 = arith.constant 1 : i32
    %1 = arith.subi %0, %c1_i32 : i32
    %c0_i32 = arith.constant 0 : i32
    %2 = arith.maxsi %1, %c0_i32 : i32
    %c0_i32_0 = arith.constant 0 : i32
    %c0_i32_1 = arith.constant 0 : i32
    %c0_i32_2 = arith.constant 0 : i32
    return %arg0, %2, %c0_i32_0, %c0_i32_1 : i32, i32, i32, i32
  }
  func.func @transform_2(%arg0: i32, %arg1: i32) -> (i32, i32, i32, i32) {
    %c1_i32 = arith.constant 1 : i32
    %0 = arith.addi %arg1, %c1_i32 : i32
    %c8_i32 = arith.constant 8 : i32
    %1 = arith.muli %0, %c8_i32 : i32
    %c15_i32 = arith.constant 15 : i32
    %2 = arith.minsi %1, %c15_i32 : i32
    %c0_i32 = arith.constant 0 : i32
    %c0_i32_0 = arith.constant 0 : i32
    %c0_i32_1 = arith.constant 0 : i32
    return %arg0, %2, %c0_i32, %c0_i32_0 : i32, i32, i32, i32
  }
  func.func @transform_3(%arg0: i32, %arg1: i32) -> (i32, i32, i32) {
    %c0_i32 = arith.constant 0 : i32
    %c0_i32_0 = arith.constant 0 : i32
    %c0_i32_1 = arith.constant 0 : i32
    %c0_i32_2 = arith.constant 0 : i32
    return %c0_i32, %c0_i32_0, %c0_i32_1 : i32, i32, i32
  }
  func.func @transform_4(%arg0: i32, %arg1: i32) -> (i32, i32) {
    %c0_i32 = arith.constant 0 : i32
    %c0_i32_0 = arith.constant 0 : i32
    %c0_i32_1 = arith.constant 0 : i32
    return %c0_i32, %c0_i32_0 : i32, i32
  }
  func.func @transform_5(%arg0: i32, %arg1: i32) -> (i32, i32) {
    %c0_i32 = arith.constant 0 : i32
    %c0_i32_0 = arith.constant 0 : i32
    %c0_i32_1 = arith.constant 0 : i32
    return %c0_i32, %c0_i32_0 : i32, i32
  }
  func.func @transform_6(%arg0: i32, %arg1: i32) -> (i32, i32, i32, i32) {
    %c0_i32 = arith.constant 0 : i32
    %c0_i32_0 = arith.constant 0 : i32
    %c0_i32_1 = arith.constant 0 : i32
    return %arg0, %arg1, %c0_i32, %c0_i32_0 : i32, i32, i32, i32
  }
}

</mosaic_0001>

<bundles_post_ra>
// kernel: tpu_custom_call.1
= control target key start
LH: loop header
LB: loop body
LE: loop exit
PB: predicated region body
PF: predicated region fallthrough
CT: control target
= control target key end

     0   :  { %s3548_s0 = inlined_call_operand.vmem [shape: bf16[2,16,16,3], index: 0, kind: input, shape index: {}]   ;;  %s3549_s1 = inlined_call_operand.vmem [shape: bf16[2,16,16,3], index: 1, kind: input, shape index: {}]   ;;  %s3550_s2 = inlined_call_operand.vmem [shape: bf16[2,16,16,3], index: 2, kind: input, shape index: {}]   ;;  %s3551_s3 = inlined_call_operand.vmem [shape: bf16[9,3,16], index: 3, kind: input, shape index: {}]   ;;  %s3552_s4 = inlined_call_operand.vmem [shape: f32[1,16], index: 4, kind: input, shape index: {}]   ;;  %s3553_s5 = inlined_call_operand.vmem [shape: f32[1,16], index: 5, kind: input, shape index: {}]   ;;  %s3554_s6 = inlined_call_operand.hbm [shape: bf16[2,16,16,16], index: 6, kind: output, shape index: {}]  }
   0x1   :  { %3558 = sst [smem:[#allocation30_spill]] %s3548_s0 }
   0x2   :  { %11 = vsyncpa [#allocation3], 0 }
   0x3   :  { %13 = vsyncpa [#allocation3 + $0x1], 0  ;;  %s2719_s21 = smov 0   ;;  %s2721_s22 = smov 0  }
   0x4   :  { %s2723_s23 = smov 0   ;;  %s2725_s24 = smov 0  }
   0x5   :  { %s2727_s25 = smov 0   ;;  %s2729_s26 = smov 0  }
   0x6   :  { %s2731_s27 = smov 0   ;;  %s2733_s28 = smov 0  }
   0x7 LB: > { %3559 = sst [smem:[#allocation5_spill]] %s2674_s27  ;;  %s2086_s29 = sadd.s32 4294967295, %s2678_s28   ;;  %s2678_s28 = sphi %s2733_s28, %s19_s28   ;;  %s2674_s27 = sphi %s2731_s27, %s3616_s27   ;;  %s2670_s26 = sphi %s2729_s26, %s3621_s26   ;;  %s2666_s25 = sphi %s2727_s25, %s3614_s25   ;;  %s2662_s24 = sphi %s2725_s24, %s3620_s24   ;;  %s2658_s23 = sphi %s2723_s23, %s3619_s23   ;;  %s2654_s22 = sphi %s2721_s22, %s3618_s22   ;;  %s2650_s21 = sphi %s2719_s21, %s3617_s21  }
   0x8   : > { %s2087_s30 = sadd.s32 4294967294, %s2678_s28   ;;  %s28_s7 = sadd.s32 1, %s2670_s26 }
   0x9   : > { %p29_p0 = scmp.ge.s32.totalorder %s28_s7, 2  ;;  %s31_s8 = sadd.s32 1, %s2674_s27 }
   0xa   : > { %p213_p1 = scmp.ne.s32.totalorder %s2658_s23, %s2654_s22  ;;  %p214_p2 = scmp.eq.s32.totalorder %s2086_s29, 3 }
   0xb   : > { %s3623_s7 = smov (%p29_p0, %s28_s7), 0  ;;  %s3625_s8 = smov (!%p29_p0, %s31_s8), %s2674_s27 }
   0xc   : > { %3560 = sst [smem:[#allocation6_spill]] %s3623_s7  ;;  %s199_s9 = ssub.s32 %s2670_s26, %s3623_s7 }
   0xd   : > { %p2770_p3 = por %p214_p2, %p213_p1  ;;  %p33_p4 = scmp.ge.s32.totalorder %s3625_s8, 2 }
   0xe   : > { %p219_p5 = scmp.ne.s32.totalorder %s2654_s22, %s2650_s21  ;;  %p220_p6 = scmp.eq.s32.totalorder %s2087_s30, 3 }
   0xf   : > { %p2096_p7 = scmp.ge.s32.totalorder %s2678_s28, 1  ;;  %s3627_s8 = smov (%p33_p4, %s3625_s8), 0 }
  0x10   : > { %3562 = sst [smem:[#allocation7_spill]] %s3627_s8  ;;  %p2779_p8 = por %p220_p6, %p219_p5 }
  0x11   : > { %p301_p9 = scmp.lt.s32.totalorder %s2678_s28, 5  ;;  %s198_s12 = ssub.s32 %s2674_s27, %s3627_s8 }
  0x12   : > { %s203_s13 = sadd.s32 1, %s2658_s23  ;;  %s200_s14 = sor.u32 %s199_s9, %s198_s12 }
  0x13   : > { %p302_p10 = pnand %p2096_p7, %p301_p9  ;;  %p201_p11 = scmp.eq.s32.totalorder %s200_s14, 0 }
  0x15   : > { %s2788_s15 = scalar_select %p201_p11, %s2658_s23, %s203_s13  }
  0x16   : > { %305 = sbr.rel (%p302_p10) target bundleno = 420 (0x1a4), region = 44 }
  0x1b   : > { %vm597_vm0 = vcmask 1040384   ;;  %v2129_v0 = vld [vmem:[%s3551_s3 + $0x2] sm:$0x3]  ;;  %vm674_vm1 = vcmask 1041408   ;;  %s2794_s18 = sshll.u32 %s2662_s24, 3  ;;  %v2680_v1 = vmov 65535  }
  0x1c   : > { %v675_v2 = vsel %vm597_vm0, 4294967295, %v2680_v1  ;;  %p363_p12 = scmp.lt.s32.totalorder %s2666_s25, 1  ;;  %p365_p13 = scmp.lt.s32.totalorder %s2794_s18, 15  ;;  %v653_v3 = vld [vmem:[%s3551_s3] sm:$0x3]  ;;  %vm656_vm2 = vcmask 23552  }
  0x1d   : > { %v2802_v4 = vsel %vm674_vm1, %v675_v2, 0  ;;  %s2805_s29 = sadd.s32 4294967295, %s2794_s18  ;;  %v2146_v5 = vld [vmem:[%s3551_s3 + $0x4] sm:$0x3]  ;;  %v2155_v9 = vld [vmem:[%s3551_s3 + $0x6] sm:$0x3] }
  0x1e   : > { %v678_v6 = vand.u32 %v2129_v0, %v2802_v4  ;;  %s364_s12 = scalar_select %p363_p12, %s2666_s25, 1  ;;  %v802_v7 = vand.u32 %v2802_v4, %v653_v3  ;;  %v2814_v8 = vand.u32 %v2146_v5, %v2802_v4  ;;  %v2841_v12 = vand.u32 %v2155_v9, %v2802_v4  ;;  %v2164_v24 = vld [vmem:[%s3551_s3 + $0x8] sm:$0x3]  ;;  %v2173_v51 = vld [vmem:[%s3551_s3 + $0xa] sm:$0x3] }
  0x1f   : > { %s366_s13 = scalar_select %p365_p13, %s2794_s18, 15  ;;  %vm598_vm3 = vsmask.f32 256  ;;  %vm640_vm4 = vcmask 1047552   ;;  %v2903_v32 = vand.u32 %v2164_v24, %v2802_v4  ;;  %vm641_vm5 = vsmask.f32 7424 }
  0x20   : > { %2502 = vmatprep.subr.bf16.mxu1 %v678_v6  ;;  %s2817_s14 = sshll.u32 %s364_s12, 5  ;;  %2340 = vmatprep.subr.bf16.mxu0 %v678_v6  ;;  %p375_p0 = scmp.gt.s32.totalorder %s2805_s29, 0  ;;  %vm2919_vm6 = vmand %vm597_vm0, %vm598_vm3  ;;  %v2971_v61 = vand.u32 %v2173_v51, %v2802_v4  ;;  %v2182_v9 = vld [vmem:[%s3551_s3 + $0xc] sm:$0x3]  ;;  %vm1925_vm8 = vcmask 125952  }
  0x21   : > { %2503 = vmatpush3.bf16.msra.mxu1 %v678_v6  ;;  %s2099_s16 = sshll.u32 %s366_s13, 1  ;;  %2341 = vmatpush3.bf16.msra.mxu0 %v678_v6  ;;  %p2104_p1 = scmp.lt.s32.totalorder %s2805_s29, 15  ;;  %vm2936_vm7 = vmand %vm640_vm4, %vm641_vm5 }
  0x22   : > { %s369_s17 = sadd.s32 %s2817_s14, %s2099_s16  ;;  %2358 = vmatprep.subr.bf16.mxu1 %v802_v7  ;;  %2376 = vmatprep.subr.bf16.mxu0 %v2814_v8  ;;  %s2241_s9 = sadd.s32 8, %s2794_s18 }
  0x23   : > { %s2101_s19 = sshll.u32 %s369_s17, 2  ;;  %s3564_s0 = sld [smem:[#allocation30_spill]] }
  0x24   : > { %p411_p2 = scmp.gt.s32.totalorder %s2662_s24, 0  ;;  %p2843_p4 = scmp.lt.s32.totalorder %s2241_s9, 15 }
  0x25   : > { %s376_s13 = scalar_select %p375_p0, %s2805_s29, 0 }
  0x26   : > { %s412_s8 = scalar_select %p411_p2, 1, 0 }
  0x27   : > { %s3629_s13 = smov (!%p2104_p1, %s376_s13), 15  ;;  %s3631_s9 = smov (!%p2843_p4, %s2241_s9), 15 }
  0x28   : > { %s2109_s16 = sshll.u32 %s3629_s13, 1  ;;  %s3635_s9 = smov (!%p2843_p4, %s3631_s9), 15 }
  0x29   : > { %s2830_s7 = scalar_lea.vmem %s3564_s0, %s2101_s19  ;;  %s383_s17 = sadd.s32 %s2109_s16, %s2817_s14 }
  0x2a   : > { %v2834_v10 = vld [vmem:[%s2830_s7 + $0x18] sm:$0xff]   ;;  %v2838_v11 = vld [vmem:[%s2830_s7 + $0x20] sm:$0xff]   ;;  %v2850_v13 = vld [vmem:[%s2830_s7 + $0x28] sm:$0xff]   ;;  %s413_s19 = scvt.s32.f32 %s412_s8  ;;  %s2111_s29 = sshll.u32 %s383_s17, 2 }
  0x2b   : > { %2350 = vmatprep.mubr.msk.bf16.mxu1 %vm656_vm2, %v2834_v10  ;;  %v2861_v14 = vld [vmem:[%s2830_s7 + $0x30] sm:$0xff]   ;;  %v2868_v15 = vld [vmem:[%s2830_s7] sm:$0xff]   ;;  %s385_s16 = scalar_lea.vmem %s3549_s1, %s2111_s29  ;;  %v2874_v16 = vld [vmem:[%s2830_s7 + $0x8] sm:$0xff]   ;;  %p432_p6 = scmp.lt.s32.totalorder %s2662_s24, 1  ;;  %v546_v36 = vshrl.u32 %v2834_v10, 16  ;;  %v549_v50 = vshll.u32 %v2834_v10, 16 }
  0x2c   : > { %2351 = vmatmul.mubr.msk.bf16.vlgmr.msra.gmra.mxu1 %vm656_vm2, %v2838_v11  ;;  %s416_s20 = sshrl.u32 %s413_s19, 16  ;;  %p415_p5 = scmp.ne.f32.partialorder %s413_s19, %s413_s19  ;;  %v525_v17 = vshrl.u32 %v2868_v15, 16  ;;  %v409_v18 = vld [vmem:[%s385_s16] sm:$0xf]  ;;  %v410_v19 = vld [vmem:[%s385_s16 + $0x4] sm:$0xf] }
  0x2d   : > { %2354 = vmatprep.mubr.msk.bf16.mxu1 %vm656_vm2, %v2850_v13  ;;  %2359 = vmatpush3.bf16.msra.mxu1 %v802_v7  ;;  %s417_s30 = sand.u32 1, %s416_s20  ;;  %s2880_s20 = sshll.u32 %s3635_s9, 1  ;;  %v532_v20 = vshrl.u32 %v2874_v16, 16  ;;  %v528_v26 = vshll.u32 %v2868_v15, 16  ;;  %v2892_v27 = vld [vmem:[%s2830_s7 + $0x10] sm:$0xff]   ;;  %v2895_v28 = vld [vmem:[%s2830_s7 + $0x38] sm:$0xff]  }
  0x2e   : > { %2394 = vmatprep.subr.bf16.mxu1 %v2841_v12  ;;  %s418_s12 = sadd.s32 32767, %s417_s30  ;;  %v527_v25 = vrot.slane %v525_v17, 7  ;;  %v535_v31 = vshll.u32 %v2874_v16, 16  ;;  %v577_v33 = vshll.u32 %v2895_v28, 16  ;;  %v539_v38 = vshrl.u32 %v2892_v27, 16 }
  0x2f   : > { %s419_s0 = sadd.s32 %s418_s12, %s413_s19  ;;  %v534_v30 = vrot.slane %v532_v20, 7  ;;  %v574_v39 = vshrl.u32 %v2895_v28, 16  ;;  %v548_v49 = vrot.slane %v546_v36, 7  ;;  %v542_v54 = vshll.u32 %v2892_v27, 16 }
  0x30   : > { %s420_s27 = sand.u32 4294901760, %s419_s0  ;;  %s400_s0 = sadd.s32 %s2880_s20, %s2817_s14  ;;  %v530_v37 = vor.u32 %v528_v26, %v527_v25  ;;  %v626_v40 = vrot.slane %v577_v33, 1  ;;  %v541_v53 = vrot.slane %v539_v38, 7  ;;  %v612_v58 = vrot.slane %v528_v26, 1 }
  0x31   : > { %s3633_s27 = smov (%p415_p5, %s420_s27), 2143289344  ;;  %v537_v43 = vor.u32 %v535_v31, %v534_v30  ;;  %s2118_s30 = sshll.u32 %s400_s0, 2  ;;  %v614_v60 = vrot.slane %v535_v31, 1  ;;  %v553_v62 = vshrl.u32 %v2838_v11, 16  ;;  %v551_v0 = vor.u32 %v549_v50, %v548_v49 }
  0x32   : > { %s423_s17 = sshrl.u32 %s3633_s27, 16  ;;  %v627_v45 = vor.u32 %v626_v40, %v574_v39  ;;  %v2948_v52 = vsel %vm2919_vm6, 0, %v530_v37  ;;  %v544_v63 = vor.u32 %v542_v54, %v541_v53  ;;  %v613_v1 = vor.u32 %v612_v58, %v525_v17 }
  0x33   : > { %s424_s19 = sshll.u32 %s423_s17, 16  ;;  %v2962_v57 = vsel %vm2919_vm6, 0, %v537_v43  ;;  %v560_v2 = vshrl.u32 %v2850_v13, 16  ;;  %v615_v6 = vor.u32 %v614_v60, %v532_v20  ;;  %v555_v7 = vrot.slane %v553_v62, 7 }
  0x34   : > { %2355 = vmatmul.mubr.msk.bf16.gmra.mxu1 %vm656_vm2, %v2861_v14  ;;  %s425_s29 = sor.u32 %s424_s19, %s423_s17  ;;  %v2955_v55 = vsel %vm2936_vm7, %v627_v45, 0  ;;  %v2999_v17 = vsel %vm2919_vm6, 0, %v544_v63  ;;  %v563_v24 = vshll.u32 %v2850_v13, 16  ;;  %v618_v26 = vrot.slane %v549_v50, 1 }
  0x35   : > { %v426_v21 = vstv %s425_s29  ;;  %s433_s9 = scalar_select %p432_p6, 1, 0  ;;  %v3012_v25 = vsel %vm2936_vm7, %v615_v6, 0 }
  0x36   : > { %v428_v22 = vmul.bf16 %v426_v21, %v409_v18  ;;  %v429_v23 = vmul.bf16 %v426_v21, %v410_v19  ;;  %s402_s29 = scalar_lea.vmem %s3550_s2, %s2118_s30  ;;  %v3003_v18 = vsel %vm2919_vm6, 0, %v551_v0  ;;  %v3007_v21 = vsel %vm2936_vm7, %v613_v1, 0 }
  0x37   : > { %s2908_s7 = scvt.s32.f32 %s433_s9  ;;  %v430_v3 = vld [vmem:[%s402_s29] sm:$0xf]  ;;  %v431_v5 = vld [vmem:[%s402_s29 + $0x4] sm:$0xf]  ;;  %v619_v43 = vor.u32 %v618_v26, %v546_v36  ;;  %s359_s29 = sand.u32 1, %s2654_s22  }
  0x38   : > { %v2119_v29 = vcombine.low %v428_v22, %v429_v23  ;;  %v616_v22 = vrot.slane %v542_v54, 1  ;;  %v562_v23 = vrot.slane %v560_v2, 7  ;;  %v622_v54 = vrot.slane %v563_v24, 1  ;;  %s3497_s14 = scalar_lea.sflag [#allocation3], %s359_s29 }
  0x39   : > { %s437_s12 = sshrl.u32 %s2908_s7, 16  ;;  %p436_p7 = scmp.ne.f32.partialorder %s2908_s7, %s2908_s7  ;;  %v3052_v53 = vsel %vm2936_vm7, %v619_v43, 0 }
  0x3a   : > { %v518_v34 = vshrl.u32 %v2119_v29, 16  ;;  %2342 = vmatprep.mubr.msk.bf16.mxu0 %vm656_vm2, %v2119_v29  ;;  %v521_v35 = vshll.u32 %v2119_v29, 16  ;;  %s438_s13 = sand.u32 1, %s437_s12  ;;  %v1411_v29 = vand.u32 %v2182_v9, %v2802_v4  ;;  %v617_v40 = vor.u32 %v616_v22, %v539_v38 }
  0x3b   : > { %2343 = vmatmul.mubr.msk.bf16.vlgmr.msra.gmra.mxu0 %vm656_vm2, %v2868_v15  ;;  %s439_s16 = sadd.s32 32767, %s438_s13  ;;  %v623_v63 = vor.u32 %v622_v54, %v560_v2  ;;  %v2191_v2 = vld [vmem:[%s3551_s3 + $0xe] sm:$0x3] }
  0x3c   : > { %2377 = vmatpush3.bf16.msra.mxu0 %v2814_v8  ;;  %v520_v41 = vrot.slane %v518_v34, 7  ;;  %2346 = vmatprep.mubr.msk.bf16.mxu0 %vm656_vm2, %v2874_v16  ;;  %v610_v44 = vrot.slane %v521_v35, 1  ;;  %s440_s17 = sadd.s32 %s439_s16, %s2908_s7  ;;  %v556_v8 = vshll.u32 %v2838_v11, 16  ;;  %v3044_v38 = vsel %vm2936_vm7, %v617_v40, 0  ;;  %s2681_s16 = smov [#allocation2]  }
  0x3d   : > { %2412 = vmatprep.subr.bf16.mxu0 %v2903_v32  ;;  %s441_s0 = sand.u32 4294901760, %s440_s17  ;;  %s2590_s17 = sshll.u32 %s2681_s16, 4  ;;  %s2591_s17 = int_to_ptr.vmem [resolvable:$false] %s2590_s17 }
  0x3e   : > { %v523_v46 = vor.u32 %v521_v35, %v520_v41  ;;  %v611_v47 = vor.u32 %v610_v44, %v518_v34  ;;  %s3637_s0 = smov (%p436_p7, %s441_s0), 2143289344  ;;  %v558_v31 = vor.u32 %v556_v8, %v555_v7  ;;  %v567_v34 = vshrl.u32 %v2861_v14, 16  ;;  %s2592_s19 = scalar_lea.vmem %s2591_s17, 2048 }
  0x3f   : > { %s444_s27 = sshrl.u32 %s3637_s0, 16  ;;  %v565_v41 = vor.u32 %v563_v24, %v562_v23  ;;  %v620_v51 = vrot.slane %v556_v8, 1  ;;  %v1531_v7 = vand.u32 %v2191_v2, %v2802_v4  ;;  %s2097_s0 = sshll.u32 %s359_s29, 6 }
  0x40   : > { %v600_v56 = vsel %vm2919_vm6, 0, %v523_v46  ;;  %v643_v59 = vsel %vm2936_vm7, %v611_v47, 0  ;;  %s445_s18 = sshll.u32 %s444_s27, 16  ;;  %v3035_v46 = vsel %vm2919_vm6, 0, %v558_v31  ;;  %v569_v47 = vrot.slane %v567_v34, 7 }
  0x41   : > { %2360 = vmatprep.mubr.msk.bf16.mxu1 %vm656_vm2, %v600_v56  ;;  %s446_s9 = sor.u32 %s445_s18, %s444_s27  ;;  %v3048_v36 = vsel %vm2919_vm6, 0, %v565_v41  ;;  %v621_v60 = vor.u32 %v620_v51, %v553_v62  ;;  %s3417_s27 = scalar_lea.vmem [#allocation2], %s2097_s0 }
  0x42   : > { %2361 = vmatmul.mubr.msk.bf16.vlgmr.msra.gmra.mxu1 %vm656_vm2, %v2948_v52  ;;  %s2258_s18 = sshll.u32 %s2662_s24, 4 }
  0x43   : > { %2347 = vmatmul.mubr.msk.bf16.gmra.mxu0 %vm656_vm2, %v2892_v27  ;;  %2364 = vmatprep.mubr.msk.bf16.mxu1 %vm656_vm2, %v2962_v57  ;;  %v3074_v1 = vsel %vm2936_vm7, %v621_v60, 0 }
  0x44   : > { %2395 = vmatpush3.bf16.msra.mxu1 %v2841_v12  ;;  %2378 = vmatprep.mubr.msk.bf16.mxu0 %vm656_vm2, %v643_v59  ;;  %v447_v12 = vstv %s446_s9  ;;  %s2230_s9 = sshll.u32 %s2666_s25, 5  ;;  %s1959_s25 = sshll.u32 %s3417_s27, 4  ;;  %s3489_s25 = int_to_ptr.vmem [resolvable:$true] %s1959_s25 }
  0x45   : > { %2430 = vmatprep.subr.bf16.mxu1 %v2971_v61  ;;  %v449_v19 = vmul.bf16 %v447_v12, %v430_v3  ;;  %v450_v20 = vmul.bf16 %v447_v12, %v431_v5  ;;  %v3078_v5 = vsel %vm2936_vm7, %v623_v63, 0  ;;  %s1956_s7 = sadd.s32 %s2258_s18, %s2230_s9  ;;  %s2586_s8 = scalar_lea.vmem %s3489_s25, 1024 }
  0x46   : > { %s2231_s24 = sshll.u32 %s1956_s7, 6  ;;  %p2587_p9 = scmp.ne.s32.totalorder %s3489_s25, %s2586_s8 }
  0x47   : > { %v3015_v30 = vcombine.low %v449_v19, %v450_v20  ;;  %s3487_s13 = scalar_lea.hbm %s3554_s6, %s2231_s24  ;;  %p2593_p12 = scmp.lt.s32.totalorder %s3489_s25, %s2591_s17 }
  0x48   : > { %p2588_p10 = pnand %p2587_p9, %p2770_p3  ;;  %p2594_p13 = scmp.lt.s32.totalorder %s2592_s19, %s2586_s8 }
  0x49   : > { %v581_v35 = vshrl.u32 %v3015_v30, 16  ;;  %v584_v37 = vshll.u32 %v3015_v30, 16 }
  0x4a   : > { %2365 = vmatmul.mubr.msk.bf16.gmra.mxu1 %vm656_vm2, %v2999_v17  ;;  %p2589_p11 = pneg %p2588_p10  ;;  %p2595_p0 = por %p2594_p13, %p2593_p12 }
  0x4b   : > { %2379 = vmatmul.mubr.msk.bf16.vlgmr.msra.gmra.mxu0 %vm656_vm2, %v3007_v21  ;;  %2368 = vmatprep.mubr.msk.bf16.mxu1 %vm656_vm2, %v3003_v18  ;;  %v583_v44 = vrot.slane %v581_v35, 7  ;;  %v628_v45 = vrot.slane %v584_v37, 1 }
  0x4c   : > { %2413 = vmatpush3.bf16.msra.mxu0 %v2903_v32  ;;  %2382 = vmatprep.mubr.msk.bf16.mxu0 %vm656_vm2, %v3012_v25  ;;  %v570_v32 = vshll.u32 %v2861_v14, 16  ;;  %p2596_p1 = pnand %p2595_p0, %p2589_p11 }
  0x4d   : > { %2448 = vmatprep.subr.bf16.mxu0 %v1411_v29  ;;  %v3038_v49 = vor.u32 %v584_v37, %v583_v44  ;;  %v3040_v50 = vor.u32 %v628_v45, %v581_v35 }
  0x4e   : > { %v572_v59 = vor.u32 %v570_v32, %v569_v47  ;;  %v624_v3 = vrot.slane %v570_v32, 1 }
  0x4f   : > { %v609_v56 = vsel %vm2919_vm6, 0, %v3038_v49  ;;  %v652_v58 = vsel %vm2936_vm7, %v3040_v50, 0 }
  0x50   : > { %v607_v0 = vsel %vm2919_vm6, 0, %v572_v59  ;;  %v625_v62 = vor.u32 %v624_v3, %v567_v34 }
  0x52   : > { %2369 = vmatmul.mubr.msk.bf16.gmra.mxu1 %vm656_vm2, %v3035_v46  ;;  %v650_v6 = vsel %vm2936_vm7, %v625_v62, 0 }
  0x53   : > { %2383 = vmatmul.mubr.msk.bf16.gmra.mxu0 %vm656_vm2, %v3044_v38  ;;  %2372 = vmatprep.mubr.msk.bf16.mxu1 %vm656_vm2, %v3048_v36 }
  0x54   : > { %2386 = vmatprep.mubr.msk.bf16.mxu0 %vm656_vm2, %v3052_v53 }
  0x5a   : > { %2373 = vmatmul.mubr.msk.bf16.gmra.mxu1 %vm656_vm2, %v607_v0 }
  0x5b   : > { %2387 = vmatmul.mubr.msk.bf16.gmra.mxu0 %vm656_vm2, %v3074_v1  ;;  %2396 = vmatprep.mubr.msk.bf16.mxu1 %vm656_vm2, %v2948_v52  ;;  %v2200_v52 = vld [vmem:[%s3551_s3 + $0x10] sm:$0x3] }
  0x5c   : > { %2390 = vmatprep.mubr.msk.bf16.mxu0 %vm656_vm2, %v3078_v5  ;;  %v1652_v8 = vand.u32 %v2200_v52, %v2802_v4 }
  0x62   : > { %2397 = vmatmul.mubr.msk.bf16.vlgmr.msra.gmra.mxu1 %vm656_vm2, %v2962_v57 }
  0x63   : > { %2391 = vmatmul.mubr.msk.bf16.gmra.mxu0 %vm656_vm2, %v650_v6  ;;  %2400 = vmatprep.mubr.msk.bf16.mxu1 %vm656_vm2, %v2999_v17 }
  0x64   : > { %2431 = vmatpush3.bf16.msra.mxu1 %v2971_v61  ;;  %2414 = vmatprep.mubr.msk.bf16.mxu0 %vm656_vm2, %v2868_v15  ;;  %v576_v15 = vrot.slane %v574_v39, 7 }
  0x65   : > { %2466 = vmatprep.subr.bf16.mxu1 %v1531_v7 }
  0x66   : > { %v579_v4 = vor.u32 %v577_v33, %v576_v15 }
  0x68   : > { %v608_v61 = vsel %vm2919_vm6, 0, %v579_v4 }
  0x6a   : > { %2401 = vmatmul.mubr.msk.bf16.gmra.mxu1 %vm656_vm2, %v3003_v18 }
  0x6b   : > { %2415 = vmatmul.mubr.msk.bf16.vlgmr.msra.gmra.mxu0 %vm656_vm2, %v2874_v16  ;;  %2404 = vmatprep.mubr.msk.bf16.mxu1 %vm656_vm2, %v3035_v46 }
  0x6c   : > { %2449 = vmatpush3.bf16.msra.mxu0 %v1411_v29  ;;  %2418 = vmatprep.mubr.msk.bf16.mxu0 %vm656_vm2, %v2892_v27 }
  0x6d   : > { %2484 = vmatprep.subr.bf16.mxu0 %v1652_v8 }
  0x72   : > { %2405 = vmatmul.mubr.msk.bf16.gmra.mxu1 %vm656_vm2, %v3048_v36 }
  0x73   : > { %2419 = vmatmul.mubr.msk.bf16.gmra.mxu0 %vm656_vm2, %v2834_v10  ;;  %2408 = vmatprep.mubr.msk.bf16.mxu1 %vm656_vm2, %v607_v0 }
  0x74   : > { %2422 = vmatprep.mubr.msk.bf16.mxu0 %vm656_vm2, %v2838_v11 }
  0x7a   : > { %2409 = vmatmul.mubr.msk.bf16.gmra.mxu1 %vm656_vm2, %v608_v61 }
  0x7b   : > { %2423 = vmatmul.mubr.msk.bf16.gmra.mxu0 %vm656_vm2, %v2850_v13  ;;  %2432 = vmatprep.mubr.msk.bf16.mxu1 %vm656_vm2, %v3007_v21 }
  0x7c   : > { %2426 = vmatprep.mubr.msk.bf16.mxu0 %vm656_vm2, %v2861_v14 }
  0x82   : > { %2433 = vmatmul.mubr.msk.bf16.vlgmr.msra.gmra.mxu1 %vm656_vm2, %v3012_v25 }
  0x83   : > { %2427 = vmatmul.mubr.msk.bf16.gmra.mxu0 %vm656_vm2, %v2895_v28  ;;  %2436 = vmatprep.mubr.msk.bf16.mxu1 %vm656_vm2, %v3044_v38 }
  0x84   : > { %2467 = vmatpush3.bf16.msra.mxu1 %v1531_v7  ;;  %2450 = vmatprep.mubr.msk.bf16.mxu0 %vm656_vm2, %v2962_v57 }
  0x8a   : > { %2437 = vmatmul.mubr.msk.bf16.gmra.mxu1 %vm656_vm2, %v3052_v53 }
  0x8b   : > { %2451 = vmatmul.mubr.msk.bf16.vlgmr.msra.gmra.mxu0 %vm656_vm2, %v2999_v17  ;;  %2440 = vmatprep.mubr.msk.bf16.mxu1 %vm656_vm2, %v3074_v1 }
  0x8c   : > { %2485 = vmatpush3.bf16.msra.mxu0 %v1652_v8  ;;  %2454 = vmatprep.mubr.msk.bf16.mxu0 %vm656_vm2, %v3003_v18 }
  0x92   : > { %2441 = vmatmul.mubr.msk.bf16.gmra.mxu1 %vm656_vm2, %v3078_v5 }
  0x93   : > { %2455 = vmatmul.mubr.msk.bf16.gmra.mxu0 %vm656_vm2, %v3035_v46  ;;  %2444 = vmatprep.mubr.msk.bf16.mxu1 %vm656_vm2, %v650_v6 }
  0x94   : > { %2458 = vmatprep.mubr.msk.bf16.mxu0 %vm656_vm2, %v3048_v36 }
  0x9a   : > { %2445 = vmatmul.mubr.msk.bf16.gmra.mxu1 %vm656_vm2, %v2955_v55 }
  0x9b   : > { %2459 = vmatmul.mubr.msk.bf16.gmra.mxu0 %vm656_vm2, %v607_v0  ;;  %2468 = vmatprep.mubr.msk.bf16.mxu1 %vm656_vm2, %v2874_v16 }
  0x9c   : > { %2462 = vmatprep.mubr.msk.bf16.mxu0 %vm656_vm2, %v608_v61 }
  0xa2   : > { %2469 = vmatmul.mubr.msk.bf16.vlgmr.msra.gmra.mxu1 %vm656_vm2, %v2892_v27 }
  0xa3   : > { %2463 = vmatmul.mubr.msk.bf16.gmra.mxu0 %vm656_vm2, %v609_v56  ;;  %2472 = vmatprep.mubr.msk.bf16.mxu1 %vm656_vm2, %v2834_v10 }
  0xa4   : > { %2486 = vmatprep.mubr.msk.bf16.mxu0 %vm656_vm2, %v3012_v25 }
  0xaa   : > { %2473 = vmatmul.mubr.msk.bf16.gmra.mxu1 %vm656_vm2, %v2838_v11 }
  0xab   : > { %2487 = vmatmul.mubr.msk.bf16.vlgmr.msra.gmra.mxu0 %vm656_vm2, %v3044_v38  ;;  %2476 = vmatprep.mubr.msk.bf16.mxu1 %vm656_vm2, %v2850_v13 }
  0xac   : > { %2490 = vmatprep.mubr.msk.bf16.mxu0 %vm656_vm2, %v3052_v53 }
  0xb2   : > { %2477 = vmatmul.mubr.msk.bf16.gmra.mxu1 %vm656_vm2, %v2861_v14 }
  0xb3   : > { %2491 = vmatmul.mubr.msk.bf16.gmra.mxu0 %vm656_vm2, %v3074_v1  ;;  %2480 = vmatprep.mubr.msk.bf16.mxu1 %vm656_vm2, %v2895_v28 }
  0xb4   : > { %2494 = vmatprep.mubr.msk.bf16.mxu0 %vm656_vm2, %v3078_v5 }
  0xba   : > { %2481 = vmatmul.mubr.msk.bf16.gmra.mxu1 %vm656_vm2, %v3015_v30 }
  0xbb   : > { %2495 = vmatmul.mubr.msk.bf16.gmra.mxu0 %vm656_vm2, %v650_v6 }
  0xbc   : > { %2498 = vmatprep.mubr.msk.bf16.mxu0 %vm656_vm2, %v2955_v55 }
  0xc3   : > { %2499 = vmatmul.mubr.msk.bf16.gmra.mxu0 %vm656_vm2, %v652_v58 }
  0xec   : > { %v2352_v10 = vpop.f32.mrf.mxu1 }
  0xee   : > { %v746_v11 = vpop.f32.mrf.mxu1 }
  0xf0   : > { %v2353_v13 = vpop.f32.mrf.mxu1 }
  0xf2   : > { %v749_v14 = vpop.f32.mrf.mxu1 }
  0xf4   : > { %v2356_v16 = vpop.f32.mrf.mxu1 }
  0xf6   : > { %v762_v27 = vpop.f32.mrf.mxu1 }
  0xf8   : > { %v2357_v28 = vpop.f32.mrf.mxu1 }
  0xfa   : > { %v765_v42 = vpop.f32.mrf.mxu1 }
  0xfb   : > { %v2344_v33 = vpop.f32.mrf.mxu0 }
  0xfd   : > { %v714_v39 = vpop.f32.mrf.mxu0 }
  0xff   : > { %v2345_v57 = vpop.f32.mrf.mxu0 }
 0x101   : > { %v717_v9 = vpop.f32.mrf.mxu0 }
 0x102   : > { %v2362_v12 = vpop.f32.mrf.mxu1 }
 0x103   : > { %v847_v55 = vadd.f32 %v2362_v12, %v2344_v33  ;;  %v2348_v17 = vpop.f32.mrf.mxu0 }
 0x104   : > { %v838_v48 = vpop.f32.mrf.mxu1 }
 0x105   : > { %v839_v18 = vadd.f32 %v838_v48, %v714_v39  ;;  %v730_v19 = vpop.f32.mrf.mxu0 }
 0x106   : > { %v2363_v20 = vpop.f32.mrf.mxu1 }
 0x107   : > { %v850_v21 = vadd.f32 %v2363_v20, %v2345_v57  ;;  %v2349_v22 = vpop.f32.mrf.mxu0 }
 0x108   : > { %v841_v23 = vpop.f32.mrf.mxu1 }
 0x109   : > { %v842_v24 = vadd.f32 %v841_v23, %v717_v9  ;;  %v733_v25 = vpop.f32.mrf.mxu0 }
 0x10a   : > { %v2366_v26 = vpop.f32.mrf.mxu1 }
 0x10b   : > { %v863_v29 = vadd.f32 %v2366_v26, %v2348_v17  ;;  %v2380_v30 = vpop.f32.mrf.mxu0 }
 0x10c   : > { %v3199_v31 = vadd.f32 %v2380_v30, %v847_v55  ;;  %v854_v34 = vpop.f32.mrf.mxu1 }
 0x10d   : > { %v855_v35 = vadd.f32 %v854_v34, %v730_v19  ;;  %v964_v37 = vpop.f32.mrf.mxu0 }
 0x10e   : > { %v3201_v40 = vadd.f32 %v964_v37, %v839_v18  ;;  %v2367_v41 = vpop.f32.mrf.mxu1 }
 0x10f   : > { %v866_v43 = vadd.f32 %v2367_v41, %v2349_v22  ;;  %v2381_v44 = vpop.f32.mrf.mxu0 }
 0x110   : > { %v3203_v45 = vadd.f32 %v2381_v44, %v850_v21  ;;  %v857_v46 = vpop.f32.mrf.mxu1 }
 0x111   : > { %v858_v47 = vadd.f32 %v857_v46, %v733_v25  ;;  %v967_v32 = vpop.f32.mrf.mxu0 }
 0x112   : > { %v3205_v49 = vadd.f32 %v967_v32, %v842_v24  ;;  %v2370_v50 = vpop.f32.mrf.mxu1 }
 0x113   : > { %v879_v38 = vadd.f32 %v2370_v50, %v2352_v10  ;;  %v2384_v36 = vpop.f32.mrf.mxu0 }
 0x114   : > { %v3207_v51 = vadd.f32 %v2384_v36, %v863_v29  ;;  %v870_v53 = vpop.f32.mrf.mxu1 }
 0x115   : > { %v871_v54 = vadd.f32 %v870_v53, %v746_v11  ;;  %v980_v56 = vpop.f32.mrf.mxu0 }
 0x116   : > { %v3209_v58 = vadd.f32 %v980_v56, %v855_v35  ;;  %v2371_v59 = vpop.f32.mrf.mxu1 }
 0x117   : > { %v882_v60 = vadd.f32 %v2371_v59, %v2353_v13  ;;  %v2385_v63 = vpop.f32.mrf.mxu0 }
 0x118   : > { %v3211_v0 = vadd.f32 %v2385_v63, %v866_v43  ;;  %v873_v1 = vpop.f32.mrf.mxu1 }
 0x119   : > { %v874_v3 = vadd.f32 %v873_v1, %v749_v14  ;;  %v983_v5 = vpop.f32.mrf.mxu0 }
 0x11a   : > { %v3213_v62 = vadd.f32 %v983_v5, %v858_v47  ;;  %v2374_v2 = vpop.f32.mrf.mxu1 }
 0x11b   : > { %v895_v6 = vadd.f32 %v2374_v2, %v2356_v16  ;;  %v2388_v7 = vpop.f32.mrf.mxu0 }
 0x11c   : > { %v3215_v52 = vadd.f32 %v2388_v7, %v879_v38  ;;  %v886_v8 = vpop.f32.mrf.mxu1 }
 0x11d   : > { %v887_v15 = vadd.f32 %v886_v8, %v762_v27  ;;  %v996_v4 = vpop.f32.mrf.mxu0 }
 0x11e   : > { %v3217_v61 = vadd.f32 %v996_v4, %v871_v54  ;;  %v2375_v10 = vpop.f32.mrf.mxu1 }
 0x11f   : > { %v898_v11 = vadd.f32 %v2375_v10, %v2357_v28  ;;  %v2389_v13 = vpop.f32.mrf.mxu0 }
 0x120   : > { %v3219_v33 = vadd.f32 %v2389_v13, %v882_v60  ;;  %v889_v39 = vpop.f32.mrf.mxu1 }
 0x121   : > { %v890_v14 = vadd.f32 %v889_v39, %v765_v42  ;;  %v999_v57 = vpop.f32.mrf.mxu0 }
 0x122   : > { %v3221_v9 = vadd.f32 %v999_v57, %v874_v3  ;;  %v3223_v12 = vpop.f32.mrf.mxu1 }
 0x123   : > { %v2392_v16 = vpop.f32.mrf.mxu0 }
 0x124   : > { %v3225_v55 = vadd.f32 %v2392_v16, %v895_v6  ;;  %v3227_v17 = vpop.f32.mrf.mxu1 }
 0x125   : > { %v1012_v27 = vpop.f32.mrf.mxu0 }
 0x126   : > { %v3229_v48 = vadd.f32 %v1012_v27, %v887_v15  ;;  %v2399_v18 = vpop.f32.mrf.mxu1 }
 0x127   : > { %v2393_v28 = vpop.f32.mrf.mxu0 }
 0x128   : > { %v3231_v19 = vadd.f32 %v2393_v28, %v898_v11  ;;  %v1088_v20 = vpop.f32.mrf.mxu1 }
 0x129   : > { %v1015_v21 = vpop.f32.mrf.mxu0 }
 0x12a   : > { %v3233_v42 = vadd.f32 %v1015_v21, %v890_v14  ;;  %v2402_v22 = vpop.f32.mrf.mxu1 }
 0x12b   : > { %v2416_v23 = vpop.f32.mrf.mxu0 }
 0x12c   : > { %v1101_v24 = vpop.f32.mrf.mxu1 }
 0x12d   : > { %v1205_v25 = vpop.f32.mrf.mxu0 }
 0x12e   : > { %v2403_v26 = vpop.f32.mrf.mxu1 }
 0x12f   : > { %v2417_v29 = vpop.f32.mrf.mxu0 }
 0x130   : > { %v1104_v30 = vpop.f32.mrf.mxu1 }
 0x131   : > { %v1208_v34 = vpop.f32.mrf.mxu0 }
 0x132   : > { %v2406_v35 = vpop.f32.mrf.mxu1 }
 0x133   : > { %v2420_v37 = vpop.f32.mrf.mxu0 }
 0x134   : > { %v1117_v41 = vpop.f32.mrf.mxu1 }
 0x135   : > { %v1221_v43 = vpop.f32.mrf.mxu0 }
 0x136   : > { %v2407_v44 = vpop.f32.mrf.mxu1 }
 0x137   : > { %v2421_v46 = vpop.f32.mrf.mxu0 }
 0x138   : > { %v3235_v47 = vpop.f32.mrf.mxu1 }
 0x139   : > { %v3237_v32 = vpop.f32.mrf.mxu0 }
 0x13a   : > { %v3239_v50 = vpop.f32.mrf.mxu1 }
 0x13b   : > { %v3241_v38 = vpop.f32.mrf.mxu0 }
 0x13c   : > { %v3243_v36 = vpop.f32.mrf.mxu1 }
 0x13d   : > { %v3245_v53 = vpop.f32.mrf.mxu0 }
 0x13e   : > { %v3247_v54 = vpop.f32.mrf.mxu1 }
 0x13f   : > { %v3249_v56 = vpop.f32.mrf.mxu0 }
 0x140   : > { %v3251_v59 = vpop.f32.mrf.mxu1 }
 0x141   : > { %v3253_v60 = vpop.f32.mrf.mxu0 }
 0x142   : > { %v2434_v63 = vpop.f32.mrf.mxu1 }
 0x143   : > { %v3255_v1 = vpop.f32.mrf.mxu0 }
 0x144   : > { %v3257_v3 = vpop.f32.mrf.mxu1 }
 0x145   : > { %v3259_v5 = vpop.f32.mrf.mxu0 }
 0x146   : > { %v3261_v2 = vpop.f32.mrf.mxu1 }
 0x147   : > { %v3263_v6 = vpop.f32.mrf.mxu0 }
 0x148   : > { %v3265_v7 = vpop.f32.mrf.mxu1 }
 0x149   : > { %v3267_v8 = vpop.f32.mrf.mxu0 }
 0x14a   : > { %v3269_v15 = vpop.f32.mrf.mxu1 }
 0x14b   : > { %3570 = vst [vmem:[#allocation8_spill] sm:$0xff] %v3269_v15  ;;  %v2452_v4 = vpop.f32.mrf.mxu0 }
 0x14c   : > { %v3271_v10 = vpop.f32.mrf.mxu1 }
 0x14d   : > { %3571 = vst [vmem:[#allocation9_spill] sm:$0xff] %v3271_v10  ;;  %v3273_v11 = vpop.f32.mrf.mxu0 }
 0x14e   : > { %3572 = vst [vmem:[#allocation10_spill] sm:$0xff] %v3273_v11  ;;  %v3275_v13 = vpop.f32.mrf.mxu1 }
 0x14f   : > { %3573 = vst [vmem:[#allocation11_spill] sm:$0xff] %v3275_v13  ;;  %v3277_v39 = vpop.f32.mrf.mxu0 }
 0x150   : > { %3574 = vst [vmem:[#allocation12_spill] sm:$0xff] %v3277_v39  ;;  %v3279_v14 = vpop.f32.mrf.mxu1 }
 0x151   : > { %3575 = vst [vmem:[#allocation13_spill] sm:$0xff] %v3279_v14  ;;  %v3281_v57 = vpop.f32.mrf.mxu0 }
 0x152   : > { %3576 = vst [vmem:[#allocation14_spill] sm:$0xff] %v3281_v57  ;;  %v3283_v16 = vpop.f32.mrf.mxu1 }
 0x153   : > { %3577 = vst [vmem:[#allocation15_spill] sm:$0xff] %v3283_v16  ;;  %v3285_v27 = vpop.f32.mrf.mxu0 }
 0x154   : > { %3578 = vst [vmem:[#allocation16_spill] sm:$0xff] %v3285_v27  ;;  %v3287_v28 = vpop.f32.mrf.mxu1 }
 0x155   : > { %3579 = vst [vmem:[#allocation17_spill] sm:$0xff] %v3287_v28  ;;  %v3289_v21 = vpop.f32.mrf.mxu0 }
 0x156   : > { %3580 = vst [vmem:[#allocation18_spill] sm:$0xff] %v3289_v21  ;;  %v3291_v15 = vpop.f32.mrf.mxu1  ;;  %v1150_v21 = vadd.f32 %v3223_v12, %v3199_v31  ;;  %v1155_v31 = vadd.f32 %v2403_v26, %v3211_v0  ;;  %v1157_v0 = vadd.f32 %v3235_v47, %v3221_v9  ;;  %v3592_v47 = vld [vmem:[#allocation8_spill] sm:$0xff] }
 0x157   : > { %3581 = vst [vmem:[#allocation19_spill] sm:$0xff] %v3291_v15  ;;  %v3293_v10 = vpop.f32.mrf.mxu0 }
 0x158   : > { %3582 = vst [vmem:[#allocation20_spill] sm:$0xff] %v3293_v10  ;;  %v3295_v11 = vpop.f32.mrf.mxu1 }
 0x159   : > { %3583 = vst [vmem:[#allocation21_spill] sm:$0xff] %v3295_v11  ;;  %v3297_v13 = vpop.f32.mrf.mxu0  ;;  %v1148_v11 = vadd.f32 %v3227_v17, %v3201_v40  ;;  %v1153_v40 = vadd.f32 %v1104_v30, %v3213_v62  ;;  %v1162_v62 = vadd.f32 %v3239_v50, %v3225_v55  ;;  %v1161_v30 = vadd.f32 %v3251_v59, %v3233_v42 }
 0x15a   : > { %3584 = vst [vmem:[#allocation22_spill] sm:$0xff] %v3297_v13  ;;  %v3299_v39 = vpop.f32.mrf.mxu1  ;;  %v1151_v13 = vadd.f32 %v2399_v18, %v3203_v45  ;;  %v1158_v45 = vadd.f32 %v2406_v35, %v3215_v52  ;;  %v1277_v55 = vadd.f32 %v3253_v60, %v1157_v0 }
 0x15b   : > { %3585 = vst [vmem:[#allocation23_spill] sm:$0xff] %v3299_v39  ;;  %v3301_v14 = vpop.f32.mrf.mxu0  ;;  %v1270_v39 = vadd.f32 %v2416_v23, %v1150_v21  ;;  %v1268_v28 = vadd.f32 %v1205_v25, %v1148_v11  ;;  %v1273_v23 = vadd.f32 %v3237_v32, %v1153_v40  ;;  %v1281_v42 = vadd.f32 %v3267_v8, %v1161_v30 }
 0x15c   : > { %3586 = vst [vmem:[#allocation24_spill] sm:$0xff] %v3301_v14  ;;  %v3303_v57 = vpop.f32.mrf.mxu1  ;;  %v1149_v14 = vadd.f32 %v1088_v20, %v3205_v49  ;;  %v1271_v12 = vadd.f32 %v2417_v29, %v1151_v13  ;;  %v1156_v49 = vadd.f32 %v1117_v41, %v3217_v61  ;;  %v1159_v20 = vadd.f32 %v2407_v44, %v3219_v33  ;;  %v3369_v13 = vld [vmem:[%s3552_s4] ss:$0 sm:$0xff] }
 0x15d   : > { %3587 = vst [vmem:[#allocation25_spill] sm:$0xff] %v3303_v57  ;;  %v3305_v16 = vpop.f32.mrf.mxu0  ;;  %v1154_v57 = vadd.f32 %v2402_v22, %v3207_v51  ;;  %v1275_v22 = vadd.f32 %v2421_v46, %v1155_v31  ;;  %v1278_v52 = vadd.f32 %v3241_v38, %v1158_v45  ;;  %v1160_v61 = vadd.f32 %v3243_v36, %v3229_v48  ;;  %v3593_v38 = vld [vmem:[#allocation9_spill] sm:$0xff]  ;;  %v3602_v31 = vld [vmem:[#allocation18_spill] sm:$0xff] }
 0x15e   : > { %3588 = vst [vmem:[#allocation26_spill] sm:$0xff] %v3305_v16  ;;  %v3307_v27 = vpop.f32.mrf.mxu1  ;;  %v1269_v17 = vadd.f32 %v1208_v34, %v1149_v14  ;;  %v1276_v25 = vadd.f32 %v3245_v53, %v1156_v49  ;;  %v1163_v33 = vadd.f32 %v3247_v54, %v3231_v19  ;;  %v1391_v26 = vadd.f32 %v2434_v63, %v1270_v39  ;;  %v3594_v53 = vld [vmem:[#allocation10_spill] sm:$0xff]  ;;  %v3600_v39 = vld [vmem:[#allocation16_spill] sm:$0xff]  ;;  %v3603_v40 = vld [vmem:[#allocation19_spill] sm:$0xff] }
 0x15f   : > { %3589 = vst [vmem:[#allocation27_spill] sm:$0xff] %v3307_v27  ;;  %v3311_v15 = vpop.f32.mrf.mxu0  ;;  %v1152_v27 = vadd.f32 %v1101_v24, %v3209_v58  ;;  %v1274_v18 = vadd.f32 %v2420_v37, %v1154_v57  ;;  %v1279_v9 = vadd.f32 %v3249_v56, %v1159_v20  ;;  %v1282_v34 = vadd.f32 %v3255_v1, %v1162_v62  ;;  %v3595_v56 = vld [vmem:[#allocation11_spill] sm:$0xff]  ;;  %v3596_v1 = vld [vmem:[#allocation12_spill] sm:$0xff]  ;;  %v3601_v57 = vld [vmem:[#allocation17_spill] sm:$0xff] }
 0x160   : > { %3590 = vst [vmem:[#allocation28_spill] sm:$0xff] %v3311_v15  ;;  %v3316_v10 = vpop.f32.mrf.mxu1  ;;  %v1389_v48 = vadd.f32 %v3257_v3, %v1268_v28  ;;  %v1280_v37 = vadd.f32 %v3259_v5, %v1160_v61  ;;  %v1392_v41 = vadd.f32 %v3261_v2, %v1271_v12  ;;  %v1512_v19 = vadd.f32 %v2452_v4, %v1391_v26  ;;  %v3597_v5 = vld [vmem:[#allocation13_spill] sm:$0xff]  ;;  %v3599_v4 = vld [vmem:[#allocation15_spill] sm:$0xff]  ;;  %v3604_v45 = vld [vmem:[#allocation20_spill] sm:$0xff] }
 0x161   : > { %3591 = vst [vmem:[#allocation29_spill] sm:$0xff] %v3316_v10  ;;  %v3320_v16 = vpop.f32.mrf.mxu0  ;;  %v1272_v51 = vadd.f32 %v1221_v43, %v1152_v27  ;;  %v1283_v44 = vadd.f32 %v3263_v6, %v1163_v33  ;;  %v1390_v46 = vadd.f32 %v3265_v7, %v1269_v17  ;;  %v1395_v32 = vadd.f32 %v3592_v47, %v1274_v18  ;;  %v3598_v6 = vld [vmem:[#allocation14_spill] sm:$0xff]  ;;  %v3605_v49 = vld [vmem:[#allocation21_spill] sm:$0xff]  ;;  %v3380_v20 = vld [vmem:[%s3553_s5] ss:$0 sm:$0xff] }
 0x162   : > { %v2470_v15 = vpop.f32.mrf.mxu1  ;;  %v1510_v54 = vadd.f32 %v3594_v53, %v1389_v48  ;;  %v1396_v59 = vadd.f32 %v3595_v56, %v1275_v22  ;;  %v1513_v3 = vadd.f32 %v3596_v1, %v1392_v41  ;;  %v1394_v2 = vadd.f32 %v3597_v5, %v1273_v23  ;;  %v3606_v0 = vld [vmem:[#allocation22_spill] sm:$0xff] }
 0x163   : > { %v3326_v10 = vpop.f32.mrf.mxu0  ;;  %v1393_v36 = vadd.f32 %v3593_v38, %v1272_v51  ;;  %v1632_v60 = vadd.f32 %v2470_v15, %v1512_v19  ;;  %v1511_v7 = vadd.f32 %v3598_v6, %v1390_v46  ;;  %v1399_v8 = vadd.f32 %v3599_v4, %v1278_v52  ;;  %v3608_v26 = vld [vmem:[#allocation24_spill] sm:$0xff] }
 0x164   : > { %v1567_v58 = vpop.f32.mrf.mxu1  ;;  %v1516_v14 = vadd.f32 %v3600_v39, %v1395_v32  ;;  %v1397_v15 = vadd.f32 %v3601_v57, %v1276_v25  ;;  %v1400_v17 = vadd.f32 %v3603_v40, %v1279_v9  ;;  %v1517_v18 = vadd.f32 %v3604_v45, %v1396_v59  ;;  %v3607_v25 = vld [vmem:[#allocation23_spill] sm:$0xff]  ;;  %v3609_v30 = vld [vmem:[#allocation25_spill] sm:$0xff] }
 0x165   : > { %v3336_v24 = vpop.f32.mrf.mxu0  ;;  %v1630_v27 = vadd.f32 %v1567_v58, %v1510_v54  ;;  %v1514_v12 = vadd.f32 %v3602_v31, %v1393_v36  ;;  %v1398_v51 = vadd.f32 %v3605_v49, %v1277_v55  ;;  %v1515_v23 = vadd.f32 %v3606_v0, %v1394_v2  ;;  %v3610_v48 = vld [vmem:[#allocation26_spill] sm:$0xff] }
 0x166   : > { %v2471_v29 = vpop.f32.mrf.mxu1  ;;  %v1403_v33 = vadd.f32 %v3607_v25, %v1282_v34  ;;  %v1520_v9 = vadd.f32 %v3608_v26, %v1399_v8  ;;  %v1401_v55 = vadd.f32 %v3609_v30, %v1280_v37  ;;  %v3389_v41 = vadd.f32 %v3610_v48, %v1397_v15  ;;  %v3611_v46 = vld [vmem:[#allocation27_spill] sm:$0xff] }
 0x167   : > { %v3348_v35 = vpop.f32.mrf.mxu0  ;;  %v1633_v58 = vadd.f32 %v2471_v29, %v1513_v3  ;;  %v3392_v47 = vadd.f32 %v3611_v46, %v1283_v44  ;;  %v3612_v53 = vld [vmem:[#allocation28_spill] sm:$0xff]  ;;  %v3403_v37 = vadd.f32 %v3320_v16, %v1398_v51 }
 0x168   : > { %v1570_v43 = vpop.f32.mrf.mxu1  ;;  %v3397_v54 = vadd.f32 %v3612_v53, %v1400_v17  ;;  %v3613_v34 = vld [vmem:[#allocation29_spill] sm:$0xff]  ;;  %v3410_v2 = vadd.f32 %v3326_v10, %v1403_v33 }
 0x169   : > { %v3357_v50 = vpop.f32.mrf.mxu0  ;;  %v3400_v56 = vadd.f32 %v3613_v34, %v1281_v42  ;;  %v1631_v59 = vadd.f32 %v1570_v43, %v1511_v7 }
 0x16a   : > { %v2474_v63 = vpop.f32.mrf.mxu1 }
 0x16b   : > { %v2488_v11 = vpop.f32.mrf.mxu0  ;;  %v1636_v6 = vadd.f32 %v2474_v63, %v1516_v14  ;;  %v3415_v14 = vadd.f32 %v3336_v24, %v1401_v55 }
 0x16c   : > { %v1753_v28 = vadd.f32 %v2488_v11, %v1632_v60  ;;  %v1583_v21 = vpop.f32.mrf.mxu1 }
 0x16d   : > { %v1688_v22 = vpop.f32.mrf.mxu0  ;;  %v1634_v42 = vadd.f32 %v1583_v21, %v1514_v12 }
 0x16e   : > { %v1776_v62 = vmul.f32 %v3369_v13, %v1753_v28  ;;  %v1751_v52 = vadd.f32 %v1688_v22, %v1630_v27  ;;  %v2475_v61 = vpop.f32.mrf.mxu1 }
 0x16f   : > { %v2489_v19 = vpop.f32.mrf.mxu0  ;;  %v1637_v57 = vadd.f32 %v2475_v61, %v1517_v18 }
 0x170   : > { %v1799_v29 = vadd.f32 %v3380_v20, %v1776_v62  ;;  %v1774_v32 = vmul.f32 %v3369_v13, %v1751_v52  ;;  %v1754_v38 = vadd.f32 %v2489_v19, %v1633_v58  ;;  %v1586_v36 = vpop.f32.mrf.mxu1 }
 0x171   : > { %v1691_v44 = vpop.f32.mrf.mxu0  ;;  %v1635_v49 = vadd.f32 %v1586_v36, %v1515_v23 }
 0x172   : > { %vm1815_vm9 = vcmp.ge.f32.partialorder %v1799_v29, 0.0  ;;  %v1831_v60 = vmul.f32 0.2, %v1799_v29  ;;  %v1797_v1 = vadd.f32 %v3380_v20, %v1774_v32  ;;  %v1777_v3 = vmul.f32 %v3369_v13, %v1754_v38  ;;  %v2478_v5 = vpop.f32.mrf.mxu1 }
 0x173   : > { %v1752_v4 = vadd.f32 %v1691_v44, %v1631_v59  ;;  %v2492_v8 = vpop.f32.mrf.mxu0  ;;  %v1640_v61 = vadd.f32 %v2478_v5, %v1520_v9 }
 0x174   : > { %v1847_v16 = vsel %vm1815_vm9, %v1799_v29, %v1831_v60  ;;  %vm1813_vm10 = vcmp.ge.f32.partialorder %v1797_v1, 0.0  ;;  %v1829_v43 = vmul.f32 0.2, %v1797_v1  ;;  %v1800_v7 = vadd.f32 %v3380_v20, %v1777_v3  ;;  %v1599_v11 = vpop.f32.mrf.mxu1 }
 0x175   : > { %v2244_v39 = vpack.c.bf16 %v1847_v16, %v1847_v16  ;;  %v1775_v15 = vmul.f32 %v3369_v13, %v1752_v4  ;;  %v1757_v27 = vadd.f32 %v2492_v8, %v1636_v6  ;;  %v1704_v28 = vpop.f32.mrf.mxu0  ;;  %v1638_v48 = vadd.f32 %v1599_v11, %v3389_v41 }
 0x176   : > { %v1845_v31 = vsel %vm1813_vm10, %v1797_v1, %v1829_v43  ;;  %vm1816_vm11 = vcmp.ge.f32.partialorder %v1800_v7, 0.0  ;;  %v1832_v10 = vmul.f32 0.2, %v1800_v7  ;;  %v1755_v40 = vadd.f32 %v1704_v28, %v1634_v42  ;;  %v2479_v63 = vpop.f32.mrf.mxu1 }
 0x177   : > { %1928 = vst.msk [vmem:[%s3417_s27 + $0x8] sm:$0xf] %vm1925_vm8, %v2244_v39  ;;  %v2242_v21 = vpack.c.bf16 %v1845_v31, %v1845_v31  ;;  %v1798_v12 = vadd.f32 %v3380_v20, %v1775_v15  ;;  %v1780_v17 = vmul.f32 %v3369_v13, %v1757_v27  ;;  %v2493_v45 = vpop.f32.mrf.mxu0  ;;  %v1641_v38 = vadd.f32 %v2479_v63, %v3397_v54 }
 0x178   : > { %v1848_v18 = vsel %vm1816_vm11, %v1800_v7, %v1832_v10  ;;  %v1778_v51 = vmul.f32 %v3369_v13, %v1755_v40  ;;  %v1758_v22 = vadd.f32 %v2493_v45, %v1637_v57  ;;  %v1602_v24 = vpop.f32.mrf.mxu1  ;;  %v1525_v42 = vadd.f32 %v3348_v35, %v3392_v47 }
 0x179   : > { %1926 = vst.msk [vmem:[%s3417_s27] sm:$0xf] %vm1925_vm8, %v2242_v21  ;;  %v2245_v0 = vpack.c.bf16 %v1848_v18, %v1848_v18  ;;  %vm1814_vm12 = vcmp.ge.f32.partialorder %v1798_v12, 0.0  ;;  %v1830_v58 = vmul.f32 0.2, %v1798_v12  ;;  %v1803_v62 = vadd.f32 %v3380_v20, %v1780_v17  ;;  %v1707_v52 = vpop.f32.mrf.mxu0 }
 0x17a   : > { %v1801_v25 = vadd.f32 %v3380_v20, %v1778_v51  ;;  %v1781_v33 = vmul.f32 %v3369_v13, %v1758_v22  ;;  %v1756_v26 = vadd.f32 %v1707_v52, %v1635_v49  ;;  %v2482_v30 = vpop.f32.mrf.mxu1  ;;  %v1639_v8 = vadd.f32 %v1602_v24, %v3403_v37 }
 0x17b   : > { %1929 = vst.msk [vmem:[%s3417_s27 + $0xc] sm:$0xf] %vm1925_vm8, %v2245_v0  ;;  %v1846_v23 = vsel %vm1814_vm12, %v1798_v12, %v1830_v58  ;;  %vm1819_vm13 = vcmp.ge.f32.partialorder %v1803_v62, 0.0  ;;  %v1835_v55 = vmul.f32 0.2, %v1803_v62  ;;  %v2496_v19 = vpop.f32.mrf.mxu0  ;;  %v1523_v15 = vadd.f32 %v3357_v50, %v3400_v56 }
 0x17c   : > { %v2243_v46 = vpack.c.bf16 %v1846_v23, %v1846_v23  ;;  %vm1817_vm14 = vcmp.ge.f32.partialorder %v1801_v25, 0.0  ;;  %v1833_v29 = vmul.f32 0.2, %v1801_v25  ;;  %v1804_v9 = vadd.f32 %v3380_v20, %v1781_v33  ;;  %v1615_v34 = vpop.f32.mrf.mxu1 }
 0x17d   : > { %v1851_v32 = vsel %vm1819_vm13, %v1803_v62, %v1835_v55  ;;  %v1779_v36 = vmul.f32 %v3369_v13, %v1756_v26  ;;  %v1761_v53 = vadd.f32 %v2496_v19, %v1640_v61  ;;  %v1720_v59 = vpop.f32.mrf.mxu0  ;;  %v1644_v28 = vadd.f32 %v2482_v30, %v3410_v2 }
 0x17e   : > { %1927 = vst.msk [vmem:[%s3417_s27 + $0x4] sm:$0xf] %vm1925_vm8, %v2243_v46  ;;  %v2248_v44 = vpack.c.bf16 %v1851_v32, %v1851_v32  ;;  %v1849_v41 = vsel %vm1817_vm14, %v1801_v25, %v1833_v29  ;;  %vm1820_vm15 = vcmp.ge.f32.partialorder %v1804_v9, 0.0  ;;  %v1836_v60 = vmul.f32 0.2, %v1804_v9  ;;  %v2483_v39 = vpop.f32.mrf.mxu1 }
 0x17f   : > { %v2246_v1 = vpack.c.bf16 %v1849_v41, %v1849_v41  ;;  %v1802_v3 = vadd.f32 %v3380_v20, %v1779_v36  ;;  %v1784_v5 = vmul.f32 %v3369_v13, %v1761_v53  ;;  %v1759_v6 = vadd.f32 %v1720_v59, %v1638_v48  ;;  %v2497_v54 = vpop.f32.mrf.mxu0 }
 0x180   : > { %1932 = vst.msk [vmem:[%s3417_s27 + $0x18] sm:$0xf] %vm1925_vm8, %v2248_v44  ;;  %v1852_v4 = vsel %vm1820_vm15, %v1804_v9, %v1836_v60  ;;  %v1762_v16 = vadd.f32 %v2497_v54, %v1641_v38  ;;  %v1642_v12 = vadd.f32 %v1615_v34, %v3415_v14  ;;  %v1645_v17 = vadd.f32 %v2483_v39, %v1525_v42  ;;  %v1618_v45 = vpop.f32.mrf.mxu1 }
 0x181   : > { %1930 = vst.msk [vmem:[%s3417_s27 + $0x10] sm:$0xf] %vm1925_vm8, %v2246_v1  ;;  %v2249_v43 = vpack.c.bf16 %v1852_v4, %v1852_v4  ;;  %vm1818_vm0 = vcmp.ge.f32.partialorder %v1802_v3, 0.0  ;;  %v1834_v7 = vmul.f32 0.2, %v1802_v3  ;;  %v1807_v11 = vadd.f32 %v3380_v20, %v1784_v5  ;;  %v1723_v57 = vpop.f32.mrf.mxu0 }
 0x182   : > { %v1782_v35 = vmul.f32 %v3369_v13, %v1759_v6  ;;  %v1785_v47 = vmul.f32 %v3369_v13, %v1762_v16  ;;  %v1760_v27 = vadd.f32 %v1723_v57, %v1639_v8  ;;  %v1643_v52 = vadd.f32 %v1618_v45, %v1523_v15 }
 0x183   : > { %1933 = vst.msk [vmem:[%s3417_s27 + $0x1c] sm:$0xf] %vm1925_vm8, %v2249_v43  ;;  %v1850_v37 = vsel %vm1818_vm0, %v1802_v3, %v1834_v7  ;;  %vm1823_vm1 = vcmp.ge.f32.partialorder %v1807_v11, 0.0  ;;  %v1839_v31 = vmul.f32 0.2, %v1807_v11  ;;  %v2500_v10 = vpop.f32.mrf.mxu0 }
 0x184   : > { %v2247_v40 = vpack.c.bf16 %v1850_v37, %v1850_v37  ;;  %v1805_v63 = vadd.f32 %v3380_v20, %v1782_v35  ;;  %v1808_v21 = vadd.f32 %v3380_v20, %v1785_v47  ;;  %v1783_v50 = vmul.f32 %v3369_v13, %v1760_v27 }
 0x185   : > { %v1855_v56 = vsel %vm1823_vm1, %v1807_v11, %v1839_v31  ;;  %v1765_v18 = vadd.f32 %v2500_v10, %v1644_v28  ;;  %v1736_v49 = vpop.f32.mrf.mxu0 }
 0x186   : > { %1931 = vst.msk [vmem:[%s3417_s27 + $0x14] sm:$0xf] %vm1925_vm8, %v2247_v40  ;;  %v2252_v2 = vpack.c.bf16 %v1855_v56, %v1855_v56  ;;  %vm1821_vm2 = vcmp.ge.f32.partialorder %v1805_v63, 0.0  ;;  %v1837_v51 = vmul.f32 0.2, %v1805_v63  ;;  %vm1824_vm3 = vcmp.ge.f32.partialorder %v1808_v21, 0.0 }
 0x187   : > { %v1840_v22 = vmul.f32 0.2, %v1808_v21  ;;  %v1806_v24 = vadd.f32 %v3380_v20, %v1783_v50  ;;  %v1788_v0 = vmul.f32 %v3369_v13, %v1765_v18  ;;  %v1763_v58 = vadd.f32 %v1736_v49, %v1642_v12  ;;  %v2501_v62 = vpop.f32.mrf.mxu0 }
 0x188   : > { %1936 = vst.msk [vmem:[%s3417_s27 + $0x28] sm:$0xf] %vm1925_vm8, %v2252_v2  ;;  %v1853_v14 = vsel %vm1821_vm2, %v1805_v63, %v1837_v51  ;;  %v1766_v61 = vadd.f32 %v2501_v62, %v1645_v17 }
 0x189   : > { %v2250_v25 = vpack.c.bf16 %v1853_v14, %v1853_v14  ;;  %v1856_v33 = vsel %vm1824_vm3, %v1808_v21, %v1840_v22  ;;  %vm1822_vm4 = vcmp.ge.f32.partialorder %v1806_v24, 0.0  ;;  %v1838_v26 = vmul.f32 0.2, %v1806_v24  ;;  %v1739_v30 = vpop.f32.mrf.mxu0 }
 0x18a   : > { %v2253_v23 = vpack.c.bf16 %v1856_v33, %v1856_v33  ;;  %v1811_v55 = vadd.f32 %v3380_v20, %v1788_v0  ;;  %v1786_v48 = vmul.f32 %v3369_v13, %v1763_v58  ;;  %v1789_v19 = vmul.f32 %v3369_v13, %v1766_v61 }
 0x18b   : > { %1934 = vst.msk [vmem:[%s3417_s27 + $0x20] sm:$0xf] %vm1925_vm8, %v2250_v25  ;;  %v1854_v46 = vsel %vm1822_vm4, %v1806_v24, %v1838_v26  ;;  %v1764_v29 = vadd.f32 %v1739_v30, %v1643_v52 }
 0x18c   : > { %1937 = vst.msk [vmem:[%s3417_s27 + $0x2c] sm:$0xf] %vm1925_vm8, %v2253_v23  ;;  %v2251_v9 = vpack.c.bf16 %v1854_v46, %v1854_v46  ;;  %vm1827_vm5 = vcmp.ge.f32.partialorder %v1811_v55, 0.0  ;;  %v1843_v32 = vmul.f32 0.2, %v1811_v55  ;;  %v1809_v38 = vadd.f32 %v3380_v20, %v1786_v48 }
 0x18d   : > { %v1812_v36 = vadd.f32 %v3380_v20, %v1789_v19  ;;  %v1787_v53 = vmul.f32 %v3369_v13, %v1764_v29 }
 0x18e   : > { %1935 = vst.msk [vmem:[%s3417_s27 + $0x24] sm:$0xf] %vm1925_vm8, %v2251_v9  ;;  %v1859_v34 = vsel %vm1827_vm5, %v1811_v55, %v1843_v32  ;;  %vm1825_vm6 = vcmp.ge.f32.partialorder %v1809_v38, 0.0  ;;  %v1841_v59 = vmul.f32 0.2, %v1809_v38 }
 0x18f   : > { %v2256_v44 = vpack.c.bf16 %v1859_v34, %v1859_v34  ;;  %vm1828_vm7 = vcmp.ge.f32.partialorder %v1812_v36, 0.0  ;;  %v1844_v41 = vmul.f32 0.2, %v1812_v36  ;;  %v1810_v60 = vadd.f32 %v3380_v20, %v1787_v53 }
 0x190   : > { %v1857_v1 = vsel %vm1825_vm6, %v1809_v38, %v1841_v59 }
 0x191   : > { %1940 = vst.msk [vmem:[%s3417_s27 + $0x38] sm:$0xf] %vm1925_vm8, %v2256_v44  ;;  %v2254_v13 = vpack.c.bf16 %v1857_v1, %v1857_v1  ;;  %v1860_v3 = vsel %vm1828_vm7, %v1812_v36, %v1844_v41  ;;  %vm1826_vm9 = vcmp.ge.f32.partialorder %v1810_v60, 0.0  ;;  %v1842_v5 = vmul.f32 0.2, %v1810_v60 }
 0x192   : > { %v2257_v6 = vpack.c.bf16 %v1860_v3, %v1860_v3 }
 0x193   : > { %1938 = vst.msk [vmem:[%s3417_s27 + $0x30] sm:$0xf] %vm1925_vm8, %v2254_v13  ;;  %v1858_v54 = vsel %vm1826_vm9, %v1810_v60, %v1842_v5 }
 0x194   : > { %1941 = vst.msk [vmem:[%s3417_s27 + $0x3c] sm:$0xf] %vm1925_vm8, %v2257_v6  ;;  %v2255_v20 = vpack.c.bf16 %v1858_v54, %v1858_v54 }
 0x196   : > { %1939 = vst.msk [vmem:[%s3417_s27 + $0x34] sm:$0xf] %vm1925_vm8, %v2255_v20 }
 0x197   : > { %2599 = shalt.err (!%p2596_p1)
}
 0x198   : > { %s2600_s20 = scalar_lea.hbm %s3487_s13, 1024  ;;  %s2604_s27 = scalar_lea.hbm %s3554_s6, 4096 }
 0x199   : > { %p2601_p2 = scmp.ne.s32.totalorder %s3487_s13, %s2600_s20  ;;  %p2605_p6 = scmp.lt.s32.totalorder %s3487_s13, %s3554_s6 }
 0x19a   : > { %p2606_p7 = scmp.lt.s32.totalorder %s2604_s27, %s2600_s20 }
 0x19b   : > { %p2602_p4 = pnand %p2601_p2, %p2770_p3 }
 0x19c   : > { %p2607_p9 = por %p2606_p7, %p2605_p6 }
 0x19d   : > { %p2603_p5 = pneg %p2602_p4 }
 0x19f   : > { %p2608_p10 = pnand %p2607_p9, %p2603_p5 }
 0x1a1   : > { %2611 = shalt.err (!%p2608_p10)
}
 0x1a2   : > { %s2682_s7 = smov 64   ;;  %s2683_s24 = smov 4  }
 0x1a3   : > { %2504 = dma.vmem_to_hbm [thread:$0]  (%p2770_p3), %s3489_s25, 1024, %s3487_s13, %s3497_s14, %s2682_s7, %s2682_s7, %s2683_s24  }
 0x1a4 PF: > { %p2510_p11 = scmp.ge.s32.totalorder %s2678_s28, 2  ;;  %s1974_s30 = sand.u32 1, %s2650_s21  }
 0x1a5   : > { %s1975_s12 = scalar_lea.sflag [#allocation3], %s1974_s30 }
 0x1a6   : > { %p2507_p12 = pnand %p2510_p11, %p2779_p8 }
 0x1a8   : > { %p2508_p13 = pneg %p2507_p12 }
 0x1aa   : > { %2645 = dma.done.wait (%p2508_p13), %s1975_s12, 1024  }
 0x1ab   : > { %2647 = vsyncadd (%p2508_p13), %s1975_s12, 4294966272  ;;  %s19_s28 = sadd.s32 1, %s2678_s28   ;;  %s3614_s25 = sld [smem:[#allocation5_spill]] }
 0x1ac   : > { %p16_p0 = scmp.ge.s32.totalorder %s19_s28, 6   ;;  %s3615_s10 = sld [smem:[#allocation6_spill]] }
 0x1ad   : > { %s3616_s27 = sld [smem:[#allocation7_spill]]  ;;  %s3617_s21 = smov %s2654_s22 }
 0x1ae   : > { %s3618_s22 = smov %s2658_s23  ;;  %s3619_s23 = smov %s2788_s15 }
 0x1af   : > { %s3620_s24 = smov %s2670_s26  ;;  %18 = sbr.rel (!%p16_p0) target bundleno = 7 (0x7), region = 93 }
 0x1b2   : > { %s3621_s26 = smov %s3615_s10 }
 0x1b4   :  { %1980 = vsyncpa [#allocation3], 1 }
 0x1b5   :  { %1982 = vsyncpa [#allocation3 + $0x1], 1 }

</bundles_post_ra>
